<compile_context>
chip_gen: v6e
topology: v6e:2x2x1
jax: 0.10.0
libtpu: 0.0.40
codegen_flags: <defaults>
</compile_context>

<pallas_src>
import numpy as np
import jax
import jax.numpy as jnp
from jax import lax
from jax.experimental import pallas as pl
from jax.experimental.pallas import tpu as pltpu

LANES = 128  # vreg lane width; every feature axis is zero-padded to this


# --------------------------------------------------------------------- kernel
def _player_net_kernel(ps_ref, be_ref, mask_ref, w_ref, b_ref, out_ref):
    """One grid step = TB independent samples, all rows flattened to 2-D.

    Row order inside the step: [TB*n_players player rows | TB*n_board board rows]
    (the wrapper un-permutes).  All feature axes are zero-padded to 128 lanes so
    every matmul is a plain lane-dense 2-D MXU dot; the zero padding is
    mathematically inert (padded weight rows/cols and bias lanes are zero).
    """
    f32, bf16 = jnp.float32, jnp.bfloat16
    biases = b_ref[...]                                    # (8, 128) f32

    def linear(x_bf16, idx):                               # x @ W[idx] + b[idx], f32 accum
        acc = jnp.dot(x_bf16, w_ref[idx], preferred_element_type=f32)
        return acc + biases[idx]

    # player_embedding: Linear(in_features, n_embed) + ReLU
    ps = jnp.maximum(linear(ps_ref[...], 0), 0.0)          # (TB*P, 128) f32

    # torch: states = cat((player_states, board_embedding)) -- realised as an
    # in-register row concat; the player block is a multiple of 8 sublanes so
    # the board block starts on a sublane-tile boundary (no masked stores).
    states = jnp.concatenate([ps.astype(bf16), be_ref[...]], axis=0)   # (R, 128) bf16

    # q / k / v heads (the 1/sqrt(d_head) scale is folded into the q weights+bias)
    q = linear(states, 1)
    k = linear(states, 2)
    v = linear(states, 3)

    # per-sample scaled dot-product attention over the whole tile, as one (R, R)
    # score matmul plus a static block-diagonal additive mask (0 inside a sample,
    # -1e30 across samples).
    s = lax.dot_general(q.astype(bf16), k.astype(bf16),
                        (((1,), (1,)), ((), ())),          # contract feature axis (no k.T)
                        preferred_element_type=f32)
    s = s + mask_ref[...]
    m = jnp.max(s, axis=-1, keepdims=True)
    p = jnp.exp(s - m)
    p = p / jnp.sum(p, axis=-1, keepdims=True)             # exact softmax (f32)
    attn = jnp.dot(p.astype(bf16), v.astype(bf16), preferred_element_type=f32)

    # attn-out projection and output[0] Linear pre-fused into one matmul + ReLU,
    # then the final Linear(n_embed, out_features).
    h = jnp.maximum(linear(attn.astype(bf16), 4), 0.0)
    out = linear(h.astype(bf16), 5)                        # cols >= out_features are 0
    out_ref[...] = out.astype(out_ref.dtype)


# --------------------------------------------------------------------- params
def init_params(key, in_features, out_features, n_embed, n_heads):
    """Raw f32 parameters (also used by the pure-JAX reference)."""
    d_head = n_embed // n_heads
    ks = jax.random.split(key, 14)

    def dense(k, fi, fo):
        return jax.random.normal(k, (fi, fo), jnp.float32) / jnp.sqrt(jnp.float32(fi))

    def bias(k, fo):
        return 0.1 * jax.random.normal(k, (1, fo), jnp.float32)

    return {
        "emb_w": dense(ks[0], in_features, n_embed),    "emb_b": bias(ks[1], n_embed),
        "q_w": dense(ks[2], n_embed, d_head),           "q_b": bias(ks[3], d_head),
        "k_w": dense(ks[4], n_embed, d_head),           "k_b": bias(ks[5], d_head),
        "v_w": dense(ks[6], n_embed, d_head),           "v_b": bias(ks[7], d_head),
        "attn_out_w": dense(ks[8], d_head, n_embed),    "attn_out_b": bias(ks[9], n_embed),
        "out1_w": dense(ks[10], n_embed, n_embed),      "out1_b": bias(ks[11], n_embed),
        "out2_w": dense(ks[12], n_embed, out_features), "out2_b": bias(ks[13], out_features),
    }


def pack_params(raw):
    """Pack all weights into one bf16 (6,128,128) slab and all biases into one
    (8,128) f32 slab; fuse attn_out+out1; fold the attention scale into q."""
    d_head = raw["q_w"].shape[1]
    n_embed = raw["emb_w"].shape[1]
    out_features = raw["out2_w"].shape[1]
    scale = 1.0 / float(d_head) ** 0.5

    # exact algebraic fusion: Linear(d_head, n_embed) followed by Linear(n_embed, n_embed)
    fused_w = raw["attn_out_w"] @ raw["out1_w"]
    fused_b = raw["attn_out_b"] @ raw["out1_w"] + raw["out1_b"]

    def pad_w(w):
        r, c = w.shape
        assert r <= LANES and c <= LANES, "pack_params assumes every layer dim <= 128"
        return jnp.pad(w, ((0, LANES - r), (0, LANES - c)))

    def pad_b(b):
        b = jnp.reshape(b, (-1,))
        return jnp.pad(b, (0, LANES - b.shape[0]))

    w_blocks = [raw["emb_w"], raw["q_w"] * scale, raw["k_w"], raw["v_w"],
                fused_w, raw["out2_w"]]
    b_rows = [raw["emb_b"], raw["q_b"] * scale, raw["k_b"], raw["v_b"],
              fused_b, raw["out2_b"]]

    w_slab = jnp.stack([pad_w(w) for w in w_blocks]).astype(jnp.bfloat16)   # (6,128,128)
    b_slab = jnp.zeros((8, LANES), jnp.float32).at[:6].set(
        jnp.stack([pad_b(b) for b in b_rows]))                              # (8,128)
    return {"w": w_slab, "b": b_slab,
            "out_features": out_features, "n_embed": n_embed, "d_head": d_head}


# -------------------------------------------------------------------- forward
def player_net_forward(packed, player_states, board_embedding, *, block_b=8):
    """Batched forward: player_states (B, n_players, in_features),
    board_embedding (B, n_board, n_embed) -> (B, n_players+n_board, out_features)."""
    B, n_players, in_features = player_states.shape
    B2, n_board, n_embed = board_embedding.shape
    assert B == B2 and n_embed == packed["n_embed"]
    S = n_players + n_board
    out_features = packed["out_features"]
    d_head = packed["d_head"]

    # TODO(synk): torch does `board_embedding[argwhere(nonzero(board_embedding))]`
    # (a data-dependent dynamic-shape row filter); no static-shape Pallas/JAX
    # equivalent, so board rows are used as-is (assumed dense).

    # per-step sample tile: must divide B and keep every row-block a multiple of
    # 8 sublanes; otherwise fall back to the whole batch in one step (full-dim blocks).
    tb = 0
    for cand in range(min(block_b, B), 0, -1):
        if B % cand == 0 and (cand * n_players) % 8 == 0 and (cand * n_board) % 8 == 0:
            tb = cand
            break
    if tb == 0:
        tb = B
    G = B // tb
    R = tb * S

    f32, bf16 = jnp.float32, jnp.bfloat16

    # layout plumbing: zero-pad feature axes to 128 lanes, cast matmul operands to
    # bf16, flatten (sample, row) into lane-dense 2-D slabs.
    ps_in = jnp.pad(player_states, ((0, 0), (0, 0), (0, LANES - in_features)))
    ps_in = ps_in.astype(bf16).reshape(B * n_players, LANES)
    be_in = jnp.pad(board_embedding, ((0, 0), (0, 0), (0, LANES - n_embed)))
    be_in = be_in.astype(bf16).reshape(B * n_board, LANES)

    # static block-diagonal additive attention mask for one tile of tb samples,
    # rows ordered [tb*n_players player rows | tb*n_board board rows]
    sid = np.concatenate([np.repeat(np.arange(tb), n_players),
                          np.repeat(np.arange(tb), n_board)])
    neg_mask = jnp.asarray(
        np.where(sid[:, None] == sid[None, :], 0.0, -1e30).astype(np.float32))

    flops = 2 * B * (n_players * in_features * n_embed      # player embedding
                     + 3 * S * n_embed * d_head              # q/k/v
                     + 2 * S * S * d_head                    # qk^T and p@v
                     + S * d_head * n_embed                  # fused attn_out+out1
                     + S * n_embed * out_features)           # out2
    transcendentals = G * R * R                              # exp
    bytes_accessed = int(2 * (ps_in.size + be_in.size) + 4 * neg_mask.size
                         + 2 * packed["w"].size + 4 * packed["b"].size
                         + 4 * B * S * LANES)

    out_flat = pl.pallas_call(
        _player_net_kernel,
        out_shape=jax.ShapeDtypeStruct((B * S, LANES), f32),
        grid_spec=pltpu.PrefetchScalarGridSpec(
            num_scalar_prefetch=0,
            grid=(G,),
            in_specs=[
                pl.BlockSpec((tb * n_players, LANES), lambda g: (g, 0)),
                pl.BlockSpec((tb * n_board, LANES), lambda g: (g, 0)),
                pl.BlockSpec((R, R), lambda g: (0, 0)),                 # mask, resident
                pl.BlockSpec((6, LANES, LANES), lambda g: (0, 0, 0)),   # weight slab, resident
                pl.BlockSpec((8, LANES), lambda g: (0, 0)),             # bias slab, resident
            ],
            out_specs=pl.BlockSpec((R, LANES), lambda g: (g, 0)),
        ),
        compiler_params=pltpu.CompilerParams(
            dimension_semantics=("parallel",)),   # batch tiles shard across v7x's two TCs
        cost_estimate=pl.CostEstimate(flops=flops, transcendentals=transcendentals,
                                      bytes_accessed=bytes_accessed),
    )(ps_in, be_in, neg_mask, packed["w"], packed["b"])

    # un-permute: rows inside each tile are [players of tb samples | boards of tb samples]
    out = out_flat.reshape(G, R, LANES)
    p_part = out[:, : tb * n_players, :].reshape(G, tb, n_players, LANES)
    b_part = out[:, tb * n_players:, :].reshape(G, tb, n_board, LANES)
    full = jnp.concatenate([p_part, b_part], axis=2).reshape(B, S, LANES)
    return full[..., :out_features]


# ---------------------------------------------------------- pure-JAX reference
def _reference_forward(raw, player_states, board_embedding):
    d_head = raw["q_w"].shape[1]
    ps = jnp.maximum(player_states @ raw["emb_w"] + raw["emb_b"], 0.0)
    states = jnp.concatenate([ps, board_embedding], axis=0)
    q = states @ raw["q_w"] + raw["q_b"]
    k = states @ raw["k_w"] + raw["k_b"]
    v = states @ raw["v_w"] + raw["v_b"]
    s = (q @ k.T) / jnp.sqrt(jnp.float32(d_head))
    attn = jax.nn.softmax(s, axis=-1) @ v
    attn = attn @ raw["attn_out_w"] + raw["attn_out_b"]
    h = jnp.maximum(attn @ raw["out1_w"] + raw["out1_b"], 0.0)
    return h @ raw["out2_w"] + raw["out2_b"]


# ----------------------------------------------------------------------- main
if __name__ == "__main__":
    in_features, out_features = 8, 6
    n_embed, n_heads = 32, 4
    n_players, n_board = 4, 8
    batch = 16

    key = jax.random.PRNGKey(0)
    k_params, k_ps, k_be = jax.random.split(key, 3)

    raw = init_params(k_params, in_features, out_features, n_embed, n_heads)
    packed = pack_params(raw)

    player_states = jax.random.normal(k_ps, (batch, n_players, in_features), jnp.float32)
    board_embedding = jax.random.normal(k_be, (batch, n_board, n_embed), jnp.float32)

    out = player_net_forward(packed, player_states, board_embedding, block_b=8)
    out = jax.block_until_ready(out)
    assert out.shape == (batch, n_players + n_board, out_features)

    ref = jax.vmap(_reference_forward, in_axes=(None, 0, 0))(
        raw, player_states, board_embedding)
    # bf16 matmul operands (f32 accumulation) set the tolerance
    assert jnp.allclose(out, ref, rtol=5e-2, atol=5e-2), "mismatch vs pure-JAX reference"

    print("KERNEL_OK")
</pallas_src>

<mosaic_0001>
module attributes {stable_mosaic.version = 11 : i64} {
  func.func @_player_net_kernel(%arg0: i32, %arg1: memref<32x128xbf16, #tpu.memory_space<vmem>>, %arg2: memref<64x128xbf16, #tpu.memory_space<vmem>>, %arg3: memref<96x96xf32, #tpu.memory_space<vmem>>, %arg4: memref<6x128x128xbf16, #tpu.memory_space<vmem>>, %arg5: memref<8x128xf32, #tpu.memory_space<vmem>>, %arg6: memref<96x128xf32, #tpu.memory_space<vmem>>) attributes {dimension_semantics = [#tpu.dimension_semantics<parallel>], iteration_bounds = array<i64: 2>, scalar_prefetch = 0 : i64, scratch_operands = 0 : i64, tpu.core_type = #tpu.core_type<tc>, window_params = [{transform_indices = @transform_0, window_bounds = array<i64: 32, 128>}, {transform_indices = @transform_1, window_bounds = array<i64: 64, 128>}, {pipeline_mode = #tpu.pipeline_mode<synchronous>, transform_indices = @transform_2, window_bounds = array<i64: 96, 96>}, {pipeline_mode = #tpu.pipeline_mode<synchronous>, transform_indices = @transform_3, window_bounds = array<i64: 6, 128, 128>}, {pipeline_mode = #tpu.pipeline_mode<synchronous>, transform_indices = @transform_4, window_bounds = array<i64: 8, 128>}, {transform_indices = @transform_5, window_bounds = array<i64: 96, 128>}]} {
    %c0 = arith.constant 0 : index
    %c0_0 = arith.constant 0 : index
    %0 = vector.load %arg5[%c0, %c0_0] : memref<8x128xf32, #tpu.memory_space<vmem>>, vector<8x128xf32>
    %c0_1 = arith.constant 0 : index
    %c0_2 = arith.constant 0 : index
    %1 = vector.load %arg1[%c0_1, %c0_2] : memref<32x128xbf16, #tpu.memory_space<vmem>>, vector<32x128xbf16>
    %c0_3 = arith.constant 0 : index
    %c0_4 = arith.constant 0 : index
    %c0_5 = arith.constant 0 : index
    %2 = vector.load %arg4[%c0_3, %c0_4, %c0_5] : memref<6x128x128xbf16, #tpu.memory_space<vmem>>, vector<1x128x128xbf16>
    %3 = vector.shape_cast %2 : vector<1x128x128xbf16> to vector<128x128xbf16>
    %cst = arith.constant dense<0.000000e+00> : vector<32x128xf32>
    %4 = tpu.matmul %1, %3, %cst {dimension_numbers = #tpu.dot_dimension_numbers<[1], [0], [0], [1], [0, 0, 1, 1], [], []>} : vector<32x128xbf16>, vector<128x128xbf16>, vector<32x128xf32> -> vector<32x128xf32>
    %5 = vector.extract_strided_slice %0 {offsets = [0, 0], sizes = [1, 128], strides = [1, 1]} : vector<8x128xf32> to vector<1x128xf32>
    %6 = vector.shape_cast %5 : vector<1x128xf32> to vector<128xf32>
    %7 = vector.shape_cast %6 : vector<128xf32> to vector<1x128xf32>
    %8 = vector.broadcast %7 : vector<1x128xf32> to vector<32x128xf32>
    %9 = arith.addf %4, %8 : vector<32x128xf32>
    %cst_6 = arith.constant 0.000000e+00 : f32
    %10 = vector.broadcast %cst_6 : f32 to vector<32x128xf32>
    %11 = arith.maximumf %9, %10 : vector<32x128xf32>
    %12 = arith.truncf %11 : vector<32x128xf32> to vector<32x128xbf16>
    %c0_7 = arith.constant 0 : index
    %c0_8 = arith.constant 0 : index
    %13 = vector.load %arg2[%c0_7, %c0_8] : memref<64x128xbf16, #tpu.memory_space<vmem>>, vector<64x128xbf16>
    %14 = tpu.concatenate %12, %13 in 0 : vector<32x128xbf16>, vector<64x128xbf16> -> vector<96x128xbf16>
    %c1 = arith.constant 1 : index
    %c0_9 = arith.constant 0 : index
    %c0_10 = arith.constant 0 : index
    %15 = vector.load %arg4[%c1, %c0_9, %c0_10] : memref<6x128x128xbf16, #tpu.memory_space<vmem>>, vector<1x128x128xbf16>
    %16 = vector.shape_cast %15 : vector<1x128x128xbf16> to vector<128x128xbf16>
    %cst_11 = arith.constant dense<0.000000e+00> : vector<96x128xf32>
    %17 = tpu.matmul %14, %16, %cst_11 {dimension_numbers = #tpu.dot_dimension_numbers<[1], [0], [0], [1], [0, 0, 1, 1], [], []>} : vector<96x128xbf16>, vector<128x128xbf16>, vector<96x128xf32> -> vector<96x128xf32>
    %18 = vector.extract_strided_slice %0 {offsets = [1, 0], sizes = [1, 128], strides = [1, 1]} : vector<8x128xf32> to vector<1x128xf32>
    %19 = vector.shape_cast %18 : vector<1x128xf32> to vector<128xf32>
    %20 = vector.shape_cast %19 : vector<128xf32> to vector<1x128xf32>
    %21 = vector.broadcast %20 : vector<1x128xf32> to vector<96x128xf32>
    %22 = arith.addf %17, %21 : vector<96x128xf32>
    %c2 = arith.constant 2 : index
    %c0_12 = arith.constant 0 : index
    %c0_13 = arith.constant 0 : index
    %23 = vector.load %arg4[%c2, %c0_12, %c0_13] : memref<6x128x128xbf16, #tpu.memory_space<vmem>>, vector<1x128x128xbf16>
    %24 = vector.shape_cast %23 : vector<1x128x128xbf16> to vector<128x128xbf16>
    %cst_14 = arith.constant dense<0.000000e+00> : vector<96x128xf32>
    %25 = tpu.matmul %14, %24, %cst_14 {dimension_numbers = #tpu.dot_dimension_numbers<[1], [0], [0], [1], [0, 0, 1, 1], [], []>} : vector<96x128xbf16>, vector<128x128xbf16>, vector<96x128xf32> -> vector<96x128xf32>
    %26 = vector.extract_strided_slice %0 {offsets = [2, 0], sizes = [1, 128], strides = [1, 1]} : vector<8x128xf32> to vector<1x128xf32>
    %27 = vector.shape_cast %26 : vector<1x128xf32> to vector<128xf32>
    %28 = vector.shape_cast %27 : vector<128xf32> to vector<1x128xf32>
    %29 = vector.broadcast %28 : vector<1x128xf32> to vector<96x128xf32>
    %30 = arith.addf %25, %29 : vector<96x128xf32>
    %c3 = arith.constant 3 : index
    %c0_15 = arith.constant 0 : index
    %c0_16 = arith.constant 0 : index
    %31 = vector.load %arg4[%c3, %c0_15, %c0_16] : memref<6x128x128xbf16, #tpu.memory_space<vmem>>, vector<1x128x128xbf16>
    %32 = vector.shape_cast %31 : vector<1x128x128xbf16> to vector<128x128xbf16>
    %cst_17 = arith.constant dense<0.000000e+00> : vector<96x128xf32>
    %33 = tpu.matmul %14, %32, %cst_17 {dimension_numbers = #tpu.dot_dimension_numbers<[1], [0], [0], [1], [0, 0, 1, 1], [], []>} : vector<96x128xbf16>, vector<128x128xbf16>, vector<96x128xf32> -> vector<96x128xf32>
    %34 = vector.extract_strided_slice %0 {offsets = [3, 0], sizes = [1, 128], strides = [1, 1]} : vector<8x128xf32> to vector<1x128xf32>
    %35 = vector.shape_cast %34 : vector<1x128xf32> to vector<128xf32>
    %36 = vector.shape_cast %35 : vector<128xf32> to vector<1x128xf32>
    %37 = vector.broadcast %36 : vector<1x128xf32> to vector<96x128xf32>
    %38 = arith.addf %33, %37 : vector<96x128xf32>
    %39 = arith.truncf %22 : vector<96x128xf32> to vector<96x128xbf16>
    %40 = arith.truncf %30 : vector<96x128xf32> to vector<96x128xbf16>
    %cst_18 = arith.constant dense<0.000000e+00> : vector<96x96xf32>
    %41 = tpu.matmul %39, %40, %cst_18 {dimension_numbers = #tpu.dot_dimension_numbers<[1], [1], [0], [0], [0, 0, 1, 0], [], []>} : vector<96x128xbf16>, vector<96x128xbf16>, vector<96x96xf32> -> vector<96x96xf32>
    %c0_19 = arith.constant 0 : index
    %c0_20 = arith.constant 0 : index
    %42 = vector.load %arg3[%c0_19, %c0_20] : memref<96x96xf32, #tpu.memory_space<vmem>>, vector<96x96xf32>
    %43 = arith.addf %41, %42 : vector<96x96xf32>
    %cst_21 = arith.constant dense<0xFF800000> : vector<96xf32>
    %44 = vector.multi_reduction <maximumf>, %43, %cst_21 [1] : vector<96x96xf32> to vector<96xf32>
    %45 = vector.shape_cast %44 : vector<96xf32> to vector<96x1xf32>
    %46 = vector.broadcast %45 : vector<96x1xf32> to vector<96x96xf32>
    %47 = arith.subf %43, %46 : vector<96x96xf32>
    %48 = math.exp %47 : vector<96x96xf32>
    %cst_22 = arith.constant dense<0.000000e+00> : vector<96xf32>
    %49 = vector.multi_reduction <add>, %48, %cst_22 [1] : vector<96x96xf32> to vector<96xf32>
    %50 = vector.shape_cast %49 : vector<96xf32> to vector<96x1xf32>
    %51 = vector.broadcast %50 : vector<96x1xf32> to vector<96x96xf32>
    %52 = arith.divf %48, %51 : vector<96x96xf32>
    %53 = arith.truncf %52 : vector<96x96xf32> to vector<96x96xbf16>
    %54 = arith.truncf %38 : vector<96x128xf32> to vector<96x128xbf16>
    %cst_23 = arith.constant dense<0.000000e+00> : vector<96x128xf32>
    %55 = tpu.matmul %53, %54, %cst_23 {dimension_numbers = #tpu.dot_dimension_numbers<[1], [0], [0], [1], [0, 0, 1, 1], [], []>} : vector<96x96xbf16>, vector<96x128xbf16>, vector<96x128xf32> -> vector<96x128xf32>
    %56 = arith.truncf %55 : vector<96x128xf32> to vector<96x128xbf16>
    %c4 = arith.constant 4 : index
    %c0_24 = arith.constant 0 : index
    %c0_25 = arith.constant 0 : index
    %57 = vector.load %arg4[%c4, %c0_24, %c0_25] : memref<6x128x128xbf16, #tpu.memory_space<vmem>>, vector<1x128x128xbf16>
    %58 = vector.shape_cast %57 : vector<1x128x128xbf16> to vector<128x128xbf16>
    %cst_26 = arith.constant dense<0.000000e+00> : vector<96x128xf32>
    %59 = tpu.matmul %56, %58, %cst_26 {dimension_numbers = #tpu.dot_dimension_numbers<[1], [0], [0], [1], [0, 0, 1, 1], [], []>} : vector<96x128xbf16>, vector<128x128xbf16>, vector<96x128xf32> -> vector<96x128xf32>
    %60 = vector.extract_strided_slice %0 {offsets = [4, 0], sizes = [1, 128], strides = [1, 1]} : vector<8x128xf32> to vector<1x128xf32>
    %61 = vector.shape_cast %60 : vector<1x128xf32> to vector<128xf32>
    %62 = vector.shape_cast %61 : vector<128xf32> to vector<1x128xf32>
    %63 = vector.broadcast %62 : vector<1x128xf32> to vector<96x128xf32>
    %64 = arith.addf %59, %63 : vector<96x128xf32>
    %cst_27 = arith.constant 0.000000e+00 : f32
    %65 = vector.broadcast %cst_27 : f32 to vector<96x128xf32>
    %66 = arith.maximumf %64, %65 : vector<96x128xf32>
    %67 = arith.truncf %66 : vector<96x128xf32> to vector<96x128xbf16>
    %c5 = arith.constant 5 : index
    %c0_28 = arith.constant 0 : index
    %c0_29 = arith.constant 0 : index
    %68 = vector.load %arg4[%c5, %c0_28, %c0_29] : memref<6x128x128xbf16, #tpu.memory_space<vmem>>, vector<1x128x128xbf16>
    %69 = vector.shape_cast %68 : vector<1x128x128xbf16> to vector<128x128xbf16>
    %cst_30 = arith.constant dense<0.000000e+00> : vector<96x128xf32>
    %70 = tpu.matmul %67, %69, %cst_30 {dimension_numbers = #tpu.dot_dimension_numbers<[1], [0], [0], [1], [0, 0, 1, 1], [], []>} : vector<96x128xbf16>, vector<128x128xbf16>, vector<96x128xf32> -> vector<96x128xf32>
    %71 = vector.extract_strided_slice %0 {offsets = [5, 0], sizes = [1, 128], strides = [1, 1]} : vector<8x128xf32> to vector<1x128xf32>
    %72 = vector.shape_cast %71 : vector<1x128xf32> to vector<128xf32>
    %73 = vector.shape_cast %72 : vector<128xf32> to vector<1x128xf32>
    %74 = vector.broadcast %73 : vector<1x128xf32> to vector<96x128xf32>
    %75 = arith.addf %70, %74 : vector<96x128xf32>
    %c0_31 = arith.constant 0 : index
    %c0_32 = arith.constant 0 : index
    %76 = vector.load %arg6[%c0_31, %c0_32] : memref<96x128xf32, #tpu.memory_space<vmem>>, vector<96x128xf32>
    tpu.vector_store %arg6[%c0_31, %c0_32], %75 {strides = array<i32>} : memref<96x128xf32, #tpu.memory_space<vmem>>, vector<96x128xf32>,
    return
  }
  func.func @transform_0(%arg0: i32) -> (i32, i32) {
    %c0_i32 = arith.constant 0 : i32
    %c0_i32_0 = arith.constant 0 : i32
    return %arg0, %c0_i32 : i32, i32
  }
  func.func @transform_1(%arg0: i32) -> (i32, i32) {
    %c0_i32 = arith.constant 0 : i32
    %c0_i32_0 = arith.constant 0 : i32
    return %arg0, %c0_i32 : i32, i32
  }
  func.func @transform_2(%arg0: i32) -> (i32, i32) {
    %c0_i32 = arith.constant 0 : i32
    %c0_i32_0 = arith.constant 0 : i32
    %c0_i32_1 = arith.constant 0 : i32
    return %c0_i32, %c0_i32_0 : i32, i32
  }
  func.func @transform_3(%arg0: i32) -> (i32, i32, i32) {
    %c0_i32 = arith.constant 0 : i32
    %c0_i32_0 = arith.constant 0 : i32
    %c0_i32_1 = arith.constant 0 : i32
    %c0_i32_2 = arith.constant 0 : i32
    return %c0_i32, %c0_i32_0, %c0_i32_1 : i32, i32, i32
  }
  func.func @transform_4(%arg0: i32) -> (i32, i32) {
    %c0_i32 = arith.constant 0 : i32
    %c0_i32_0 = arith.constant 0 : i32
    %c0_i32_1 = arith.constant 0 : i32
    return %c0_i32, %c0_i32_0 : i32, i32
  }
  func.func @transform_5(%arg0: i32) -> (i32, i32) {
    %c0_i32 = arith.constant 0 : i32
    %c0_i32_0 = arith.constant 0 : i32
    return %arg0, %c0_i32 : i32, i32
  }
}

</mosaic_0001>

<bundles_post_ra>
// kernel: tpu_custom_call.1
= control target key start
LH: loop header
LB: loop body
LE: loop exit
PB: predicated region body
PF: predicated region fallthrough
CT: control target
= control target key end

     0   :  { %s3062_s0 = inlined_call_operand.hbm [shape: bf16[64,128], index: 0, kind: input, shape index: {}]   ;;  %s3063_s1 = inlined_call_operand.hbm [shape: bf16[128,128], index: 1, kind: input, shape index: {}]   ;;  %s3064_s2 = inlined_call_operand.hbm [shape: f32[96,96], index: 2, kind: input, shape index: {}]   ;;  %s3065_s3 = inlined_call_operand.hbm [shape: bf16[6,128,128], index: 3, kind: input, shape index: {}]   ;;  %s3066_s4 = inlined_call_operand.hbm [shape: f32[8,128], index: 4, kind: input, shape index: {}]   ;;  %s3067_s5 = inlined_call_operand.hbm [shape: f32[192,128], index: 5, kind: output, shape index: {}]  }
   0x1   :  { %3071 = sst [smem:[#allocation17_spill]] %s3062_s0 }
   0x2   :  { %3072 = sst [smem:[#allocation18_spill]] %s3064_s2 }
   0x3   :  { %3073 = sst [smem:[#allocation19_spill]] %s3065_s3 }
   0x4   :  { %10 = vsyncpa [#allocation3], 0 }
   0x5   :  { %12 = vsyncpa [#allocation3 + $0x1], 0 }
   0x6   :  { %13 = vsyncpa [#allocation6], 0 }
   0x7   :  { %15 = vsyncpa [#allocation6 + $0x1], 0 }
   0x8   :  { %16 = vsyncpa [#allocation9], 0 }
   0x9   :  { %17 = vsyncpa [#allocation4], 0 }
   0xa   :  { %19 = vsyncpa [#allocation4 + $0x1], 0  ;;  %s2631_s18 = smov 0   ;;  %s2633_s19 = smov 0  }
   0xb   :  { %s2635_s20 = smov 0   ;;  %s2637_s21 = smov 0  }
   0xc LB: > { %s2652_s22 = sadd.s32 4294967295, %s2587_s21   ;;  %s1773_s23 = sadd.s32 4294967294, %s2587_s21   ;;  %s2587_s21 = sphi %s2637_s21, %s3097_s21   ;;  %s2583_s20 = sphi %s2635_s20, %s3096_s20   ;;  %s2579_s19 = sphi %s2633_s19, %s3095_s19   ;;  %s2575_s18 = sphi %s2631_s18, %s3094_s18  }
   0xd   : > { %p45_p0 = scmp.ne.s32.totalorder %s2579_s19, %s2575_s18  ;;  %p3068_p1 = scmp.eq.s32.totalorder %s2652_s22, 0 }
   0xe   : > { %p164_p3 = scmp.eq.s32.totalorder %s1773_s23, 1  ;;  %p1774_p5 = scmp.ge.s32.totalorder %s2587_s21, 1 }
   0xf   : > { %p2661_p4 = por %p3068_p1, %p45_p0  ;;  %p171_p7 = scmp.lt.s32.totalorder %s2587_s21, 3 }
  0x10   : > { %p2666_p6 = por %p164_p3, %p45_p0  ;;  %s2589_s27 = smov [#allocation7]  }
  0x11   : > { %s3074_s24 = scalar_select %p2661_p4, 1, 0 }
  0x12   : > { %s3075_s25 = scalar_select %p2666_p6, 1, 0 }
  0x13   : > { %p2671_p8 = pnand %p1774_p5, %p171_p7  ;;  %s183_s28 = sshll.u32 %s2589_s27, 4  ;;  %s184_s28 = int_to_ptr.vmem [resolvable:$true] %s183_s28 }
  0x14   : > { %s2590_s30 = smov [#allocation8]   ;;  %s2388_s7 = scalar_lea.vmem %s184_s28, 1536 }
  0x15   : > { %p2204_p9 = pneg %p2671_p8  ;;  %s196_s6 = sshll.u32 %s2590_s30, 4  ;;  %s197_s6 = int_to_ptr.vmem [resolvable:$true] %s196_s6 }
  0x16   : > { %p2389_p13 = scmp.ne.s32.totalorder %s184_s28, %s2388_s7  ;;  %p2396_p5 = scmp.lt.s32.totalorder %s184_s28, %s184_s28 }
  0x17   : > { %p2680_p11 = pnand %p2204_p9, %p3068_p1  ;;  %p2397_p7 = scmp.lt.s32.totalorder %s2388_s7, %s2388_s7 }
  0x19   : > { %p2379_p12 = pneg %p2680_p11  ;;  %p2398_p10 = por %p2397_p7, %p2396_p5 }
  0x1b   : > { %p2391_p0 = pnand %p2389_p13, %p2379_p12 }
  0x1d   : > { %p2392_p3 = pneg %p2391_p0 }
  0x1f   : > { %p2399_p9 = pnand %p2398_p10, %p2392_p3 }
  0x21   : > { %2402 = shalt.err (!%p2399_p9)
}
  0x22   : > { %s2591_s8 = smov 128   ;;  %s2592_s9 = smov 8  }
  0x23   : > { %s3078_s2 = sld [smem:[#allocation18_spill]]  ;;  %s2414_s12 = scalar_lea.vmem %s197_s6, 6144 }
  0x24   : > { %p2415_p1 = scmp.ne.s32.totalorder %s197_s6, %s2414_s12  ;;  %p2422_p2 = scmp.lt.s32.totalorder %s197_s6, %s197_s6 }
  0x25   : > { %p2423_p6 = scmp.lt.s32.totalorder %s2414_s12, %s2414_s12 }
  0x26   : > { %p2417_p13 = pnand %p2415_p1, %p2379_p12 }
  0x27   : > { %p2424_p5 = por %p2423_p6, %p2422_p2 }
  0x28   : > { %p2418_p0 = pneg %p2417_p13 }
  0x29   : > { %2207 = dma.hbm_to_vmem [thread:$0]  (!%p2680_p11), %s3078_s2, 1536, %s184_s28, [#allocation6], %s2591_s8, %s2591_s8, %s2592_s9  }
  0x2a   : > { %p2425_p10 = pnand %p2424_p5, %p2418_p0 }
  0x2c   : > { %2428 = shalt.err (!%p2425_p10)
}
  0x2d   : > { %s2593_s13 = smov 64   ;;  %s2594_s14 = smov 4  }
  0x2e   : > { %s3079_s3 = sld [smem:[#allocation19_spill]]  ;;  %s2595_s17 = smov [#allocation10]  }
  0x2f   : > { %s210_s23 = sshll.u32 %s2595_s17, 4  ;;  %s2706_s27 = sadd.s32 1, %s2587_s21   ;;  %s211_s23 = int_to_ptr.vmem [resolvable:$true] %s210_s23 }
  0x30   : > { %s2440_s28 = scalar_lea.vmem %s211_s23, 128  ;;  %p2448_p3 = scmp.lt.s32.totalorder %s211_s23, %s211_s23 }
  0x31   : > { %p2441_p1 = scmp.ne.s32.totalorder %s211_s23, %s2440_s28  ;;  %p2449_p7 = scmp.lt.s32.totalorder %s2440_s28, %s2440_s28 }
  0x33   : > { %p2443_p2 = pnand %p2441_p1, %p2379_p12  ;;  %p2450_p9 = por %p2449_p7, %p2448_p3 }
  0x34   : > { %2210 = dma.hbm_to_vmem [thread:$0]  (!%p2680_p11), %s3079_s3, 6144, %s197_s6, [#allocation9], %s2593_s13, %s2593_s13, %s2594_s14  }
  0x35   : > { %p2444_p6 = pneg %p2443_p2 }
  0x37   : > { %p2451_p13 = pnand %p2450_p9, %p2444_p6 }
  0x39   : > { %2454 = shalt.err (!%p2451_p13)
}
  0x3a   : > { %2213 = dma.hbm_to_vmem [thread:$0]  (!%p2680_p11), %s3066_s4, 128, %s211_s23, [#allocation9]  }
  0x3b   : > { %s29_s7 = ssub.s32 %s2587_s21, %s2706_s27  ;;  %s32_s8 = sadd.s32 1, %s2583_s20 }
  0x3c   : > { %p30_p12 = scmp.eq.s32.totalorder %s29_s7, 0  ;;  %p39_p0 = scmp.ne.s32.totalorder %s2583_s20, %s2579_s19 }
  0x3d   : > { %p40_p5 = scmp.eq.s32.totalorder %s2587_s21, 0  ;;  %p2228_p10 = scmp.lt.s32.totalorder %s2587_s21, 2 }
  0x3e   : > { %s2724_s29 = scalar_select %p30_p12, %s2583_s20, %s32_s8  }
  0x3f   : > { %p41_p1 = por %p40_p5, %p39_p0  ;;  %p3080_p2 = scmp.eq.s32.totalorder %s2652_s22, 1 }
  0x40   : > { %s2733_s10 = sand.u32 1, %s2583_s20   ;;  %s1854_s11 = sshll.u32 %s2587_s21, 8 }
  0x41   : > { %p2728_p6 = por %p3080_p2, %p39_p0  ;;  %s1779_s12 = sshll.u32 %s2733_s10, 4 }
  0x42   : > { %s3082_s0 = sld [smem:[#allocation17_spill]]  ;;  %s225_s23 = scalar_lea.vmem [#allocation2], %s1779_s12 }
  0x43   : > { %s3081_s9 = scalar_select %p2728_p6, 1, 0 }
  0x44   : > { %s232_s28 = sshll.u32 %s225_s23, 4  ;;  %p2742_p11 = pnand %p2228_p10, %p41_p1  ;;  %s2746_s28 = int_to_ptr.vmem [resolvable:$true] %s232_s28 }
  0x46   : > { %p2457_p7 = pneg %p2742_p11 }
  0x48   : > { %s2740_s17 = scalar_lea.hbm %s3082_s0, %s1854_s11  ;;  %s2460_s15 = scalar_lea.hbm %s3082_s0, 512 }
  0x49   : > { %s2455_s8 = scalar_lea.hbm %s2740_s17, 256  ;;  %p2461_p12 = scmp.lt.s32.totalorder %s2740_s17, %s3082_s0 }
  0x4a   : > { %p2456_p3 = scmp.ne.s32.totalorder %s2740_s17, %s2455_s8  ;;  %p2462_p0 = scmp.lt.s32.totalorder %s2460_s15, %s2455_s8 }
  0x4c   : > { %p2458_p9 = pnand %p2457_p7, %p2456_p3  ;;  %p2463_p5 = por %p2462_p0, %p2461_p12 }
  0x4e   : > { %p2459_p13 = pneg %p2458_p9 }
  0x50   : > { %p2464_p10 = pnand %p2463_p5, %p2459_p13 }
  0x52   : > { %2467 = shalt.err (!%p2464_p10)
}
  0x53   : > { %s2468_s6 = scalar_lea.vmem %s2746_s28, 256  ;;  %s2596_s11 = smov [#allocation2]  }
  0x54   : > { %p2469_p1 = scmp.ne.s32.totalorder %s2746_s28, %s2468_s6  ;;  %s2473_s12 = sshll.u32 %s2596_s11, 4  ;;  %s2474_s12 = int_to_ptr.vmem [resolvable:$false] %s2473_s12 }
  0x55   : > { %s2475_s7 = scalar_lea.vmem %s2474_s12, 512  ;;  %p2476_p9 = scmp.lt.s32.totalorder %s2746_s28, %s2474_s12 }
  0x56   : > { %p2471_p2 = pnand %p2469_p1, %p2457_p7  ;;  %p2477_p6 = scmp.lt.s32.totalorder %s2475_s7, %s2468_s6 }
  0x58   : > { %p2472_p3 = pneg %p2471_p2  ;;  %p2478_p4 = por %p2477_p6, %p2476_p9 }
  0x5a   : > { %p2479_p12 = pnand %p2478_p4, %p2472_p3 }
  0x5c   : > { %2482 = shalt.err (!%p2479_p12)
}
  0x5d   : > { %s3084_s8 = scalar_lea.sflag [#allocation3], %s2733_s10  ;;  %s1782_s15 = sshll.u32 %s2733_s10, 5 }
  0x5e   : > { %2217 = dma.hbm_to_vmem [thread:$0]  (!%p2742_p11), %s2740_s17, 256, %s2746_s28, %s3084_s8, %s2593_s13, %s2593_s13, %s2594_s14  }
  0x5f   : > { %s1855_s16 = sshll.u32 %s2587_s21, 9  ;;  %s246_s11 = scalar_lea.vmem [#allocation5], %s1782_s15 }
  0x60   : > { %s2784_s23 = scalar_lea.hbm %s3063_s1, %s1855_s16  ;;  %s253_s12 = sshll.u32 %s246_s11, 4  ;;  %s2786_s12 = int_to_ptr.vmem [resolvable:$true] %s253_s12 }
  0x61   : > { %s3085_s0 = sand.u32 1, %s2587_s21   ;;  %s2483_s3 = scalar_lea.hbm %s2784_s23, 512 }
  0x62   : > { %s243_s2 = scalar_lea.sflag [#allocation6], %s3085_s0  ;;  %p2484_p4 = scmp.ne.s32.totalorder %s2784_s23, %s2483_s3 }
  0x63   : > { %s2488_s28 = scalar_lea.hbm %s3063_s1, 1024  ;;  %p2489_p0 = scmp.lt.s32.totalorder %s2784_s23, %s3063_s1 }
  0x64   : > { %p2486_p6 = pnand %p2484_p4, %p2457_p7  ;;  %p2490_p5 = scmp.lt.s32.totalorder %s2488_s28, %s2483_s3 }
  0x66   : > { %p2487_p13 = pneg %p2486_p6  ;;  %p2491_p10 = por %p2490_p5, %p2489_p0 }
  0x68   : > { %p2492_p1 = pnand %p2491_p10, %p2487_p13 }
  0x6a   : > { %2495 = shalt.err (!%p2492_p1)
}
  0x6b   : > { %s2496_s0 = scalar_lea.vmem %s2786_s12, 512  ;;  %s2597_s15 = smov [#allocation5]  }
  0x6c   : > { %p2497_p2 = scmp.ne.s32.totalorder %s2786_s12, %s2496_s0  ;;  %s2501_s6 = sshll.u32 %s2597_s15, 4  ;;  %s2502_s6 = int_to_ptr.vmem [resolvable:$false] %s2501_s6 }
  0x6d   : > { %s2503_s7 = scalar_lea.vmem %s2502_s6, 1024  ;;  %p2504_p12 = scmp.lt.s32.totalorder %s2786_s12, %s2502_s6 }
  0x6e   : > { %p2499_p3 = pnand %p2497_p2, %p2457_p7  ;;  %p2505_p4 = scmp.lt.s32.totalorder %s2503_s7, %s2496_s0 }
  0x70   : > { %p2500_p9 = pneg %p2499_p3  ;;  %p2506_p6 = por %p2505_p4, %p2504_p12 }
  0x72   : > { %p2507_p0 = pnand %p2506_p6, %p2500_p9 }
  0x74   : > { %2510 = shalt.err (!%p2507_p0)
}
  0x75   : > { %2220 = dma.hbm_to_vmem [thread:$0]  (!%p2742_p11), %s2784_s23, 512, %s2786_s12, %s243_s2, %s2593_s13, %s2593_s13, %s2594_s14  }
  0x76   : > { %265 = sbr.rel (%p2671_p8) target bundleno = 1795 (0x703), region = 40  ;;  %s2818_s3 = sand.u32 (!%p2671_p8), 1, %s2579_s19  }
  0x77   : > { %s1786_s11 = sshll.u32 (!%p2671_p8), %s2818_s3, 4  ;;  %s268_s10 = scalar_lea.sflag (!%p2671_p8), [#allocation3], %s2818_s3 }
  0x78   : > { %s2822_s17 = scalar_lea.vmem (!%p2671_p8), [#allocation2], %s1786_s11  ;;  %p3086_p7 = scmp.ne.s32.totalorder (!%p2671_p8), %s3074_s24, 0 }
  0x7b   : > { %2554 = dma.done.wait (%p3086_p7), %s268_s10, 256  }
  0x7c   : > { %2556 = vsyncadd (%p3086_p7), %s268_s10, 4294967040  ;;  %s276_s2 = sand.u32 1, %s2652_s22   ;;  %s1787_s26 = sshll.u32 %s2818_s3, 5 }
  0x7d   : > { %s277_s13 = scalar_lea.sflag [#allocation6], %s276_s2  ;;  %s2830_s14 = scalar_lea.vmem [#allocation5], %s1787_s26 }
  0x7e   : > { %2558 = dma.done.wait (%p3086_p7), %s277_s13, 512  }
  0x7f   : > { %2560 = vsyncadd (%p3086_p7), %s277_s13, 4294966784  ;;  %p3087_p8 = scmp.eq.s32.totalorder %s2652_s22, 0 }
  0x81   : > { %2562 = dma.done.wait (%p3087_p8), [#allocation6], 1536   ;;  %p3088_p11 = pmov %p3087_p8 }
  0x82   : > { %p3089_p13 = pmov %p3087_p8 }
  0x83   : > { %2564 = vsyncadd (%p3088_p11), [#allocation6], 4294965760 }
  0x84   : > { %2566 = dma.done.wait (%p3089_p13), [#allocation9], 6272   ;;  %p3090_p5 = pmov %p3087_p8 }
  0x85   : > { %v2274_v0 = vld [vmem:[#allocation8 + $0x38] sm:$0xff]   ;;  %v2275_v1 = vld [vmem:[#allocation8 + $0x30] sm:$0xff]   ;;  %v2276_v2 = vld [vmem:[#allocation8 + $0x28] sm:$0xff]   ;;  %v349_v27 = vlaneseq  ;;  %vm1055_vm0 = vcmask 785408   ;;  %s2185_s24 = smul.u32 96, %s2818_s3  ;;  %p3091_p1 = scmp.ne.s32.totalorder %s3081_s9, 0 }
  0x86   : > { %2568 = vsyncadd (%p3090_p5), [#allocation9], 4294961024  ;;  %1961 = vmatprep.subr.bf16.mxu0 %v2274_v0  ;;  %v2277_v3 = vld [vmem:[#allocation8 + $0x20] sm:$0xff]   ;;  %v2284_v5 = vld [vmem:[#allocation8 + $0x78] sm:$0xff]   ;;  %s1856_s23 = smul.u32 1536, %s2652_s22  ;;  %s1636_s22 = scalar_lea.sflag [#allocation4], %s2818_s3 }
  0x87   : > { %1962 = vmatpush3.bf16.msra.mxu0 %v2274_v0  ;;  %v2282_v4 = vld [vmem:[%s2822_s17] sm:$0xff]   ;;  %v2278_v6 = vld [vmem:[#allocation8 + $0x18] sm:$0xff]   ;;  %1981 = vmatprep.subr.bf16.mxu1 %v2284_v5  ;;  %v2288_v8 = vld [vmem:[#allocation8 + $0x68] sm:$0xff]   ;;  %v2846_v28 = vshrl.u32 %v349_v27, 7  ;;  %s2998_s30 = scalar_lea.vmem [#allocation11], %s2185_s24  ;;  %s2598_s15 = smov [#allocation11]  }
  0x88   : > { %1963 = vmatprep.subr.bf16.mxu0 %v2275_v1  ;;  %1977 = vmatprep.mubr.bf16.mxu0 %v2282_v4  ;;  %v2286_v7 = vld [vmem:[#allocation8 + $0x70] sm:$0xff]   ;;  %v2290_v10 = vld [vmem:[#allocation8 + $0x60] sm:$0xff]   ;;  %v2280_v11 = vld [vmem:[#allocation8 + $0x8] sm:$0xff]   ;;  %s1649_s12 = sshll.u32 %s2998_s30, 4  ;;  %s3015_s16 = scalar_lea.hbm %s3067_s5, %s1856_s23  ;;  %s3017_s12 = int_to_ptr.vmem [resolvable:$true] %s1649_s12 }
  0x89   : > { %1982 = vmatpush3.bf16.msra.mxu1 %v2284_v5  ;;  %v2279_v9 = vld [vmem:[#allocation8 + $0x10] sm:$0xff]   ;;  %v2292_v12 = vld [vmem:[#allocation8 + $0x58] sm:$0xff]   ;;  %v2281_v13 = vld [vmem:[#allocation8] sm:$0xff]   ;;  %v351_v29 = vsub.s32 0, %v2846_v28  ;;  %v519_v57 = vsub.s32 1, %v2846_v28  ;;  %s2511_s0 = scalar_lea.vmem %s3017_s12, 1536 }
  0x8a   : > { %1983 = vmatprep.subr.bf16.mxu1 %v2286_v7  ;;  %v2285_v14 = vld [vmem:[#allocation8 + $0xb8] sm:$0xff]   ;;  %v2287_v16 = vld [vmem:[#allocation8 + $0xb0] sm:$0xff]   ;;  %v2289_v17 = vld [vmem:[#allocation8 + $0xa8] sm:$0xff]   ;;  %p2512_p10 = scmp.ne.s32.totalorder %s3017_s12, %s2511_s0  ;;  %s2515_s6 = sshll.u32 %s2598_s15, 4  ;;  %s2516_s6 = int_to_ptr.vmem [resolvable:$false] %s2515_s6 }
  0x8b   : > { %1964 = vmatpush3.bf16.msra.mxu0 %v2275_v1  ;;  %v2283_v15 = vld [vmem:[%s2822_s17 + $0x8] sm:$0xff]   ;;  %v2291_v18 = vld [vmem:[#allocation8 + $0xa0] sm:$0xff]   ;;  %v2294_v20 = vld [vmem:[#allocation8 + $0x50] sm:$0xff]   ;;  %s2517_s7 = scalar_lea.vmem %s2516_s6, 3072  ;;  %p2518_p9 = scmp.lt.s32.totalorder %s3017_s12, %s2516_s6 }
  0x8c   : > { %1965 = vmatprep.subr.bf16.mxu0 %v2276_v2  ;;  %v2293_v19 = vld [vmem:[#allocation8 + $0x98] sm:$0xff]   ;;  %v2295_v21 = vld [vmem:[#allocation8 + $0x90] sm:$0xff]   ;;  %v2296_v22 = vld [vmem:[#allocation8 + $0x48] sm:$0xff]   ;;  %p2513_p2 = pnand %p2512_p10, %p3091_p1  ;;  %p2519_p12 = scmp.lt.s32.totalorder %s2517_s7, %s2511_s0 }
  0x8d   : > { %1984 = vmatpush3.bf16.msra.mxu1 %v2286_v7  ;;  %v2297_v23 = vld [vmem:[#allocation8 + $0x88] sm:$0xff]   ;;  %v2298_v24 = vld [vmem:[#allocation8 + $0x40] sm:$0xff]   ;;  %v2300_v26 = vld [vmem:[#allocation8 + $0xf8] sm:$0xff]  }
  0x8e   : > { %1985 = vmatprep.subr.bf16.mxu1 %v2288_v8  ;;  %v2299_v25 = vld [vmem:[#allocation8 + $0x80] sm:$0xff]   ;;  %v2301_v47 = vld [vmem:[#allocation8 + $0xf0] sm:$0xff]   ;;  %v2303_v48 = vld [vmem:[#allocation8 + $0xe8] sm:$0xff]   ;;  %p2514_p3 = pneg %p2513_p2  ;;  %p2520_p4 = por %p2519_p12, %p2518_p9 }
  0x8f   : > { %1966 = vmatpush3.bf16.msra.mxu0 %v2276_v2  ;;  %v2849_v30 = vld [vmem:[#allocation10] sm:$0xff]  ;;  %v2304_v49 = vld [vmem:[%s2830_s14 + $0x8] sm:$0xff]   ;;  %v2306_v50 = vld [vmem:[%s2830_s14 + $0x10] sm:$0xff]  }
  0x90   : > { %1967 = vmatprep.subr.bf16.mxu0 %v2277_v3  ;;  %v352_v32 = vrot.slane %v2849_v30, %v351_v29  ;;  %v2302_v45 = vld [vmem:[%s2830_s14] sm:$0xff]   ;;  %v2307_v52 = vld [vmem:[#allocation8 + $0xd8] sm:$0xff]   ;;  %v2309_v54 = vld [vmem:[#allocation8 + $0xd0] sm:$0xff]   ;;  %v2858_v60 = vrot.slane %v2849_v30, %v519_v57  ;;  %p2521_p6 = pnand %p2520_p4, %p2514_p3 }
  0x91   : > { %1986 = vmatpush3.bf16.msra.mxu1 %v2288_v8  ;;  %v2305_v51 = vld [vmem:[#allocation8 + $0xe0] sm:$0xff]   ;;  %v2308_v53 = vld [vmem:[%s2830_s14 + $0x18] sm:$0xff]   ;;  %v2310_v55 = vld [vmem:[#allocation8 + $0xc8] sm:$0xff]  }
  0x92   : > { %1987 = vmatprep.subr.bf16.mxu1 %v2290_v10  ;;  %v2311_v56 = vld [vmem:[#allocation8 + $0xc0] sm:$0xff]  }
  0x93   : > { %1968 = vmatpush3.bf16.msra.mxu0 %v2277_v3 }
  0x94   : > { %1969 = vmatprep.subr.bf16.mxu0 %v2278_v6 }
  0x95   : > { %1988 = vmatpush3.bf16.msra.mxu1 %v2290_v10 }
  0x96   : > { %1989 = vmatprep.subr.bf16.mxu1 %v2292_v12 }
  0x97   : > { %1970 = vmatpush3.bf16.msra.mxu0 %v2278_v6 }
  0x98   : > { %1971 = vmatprep.subr.bf16.mxu0 %v2279_v9 }
  0x99   : > { %1990 = vmatpush3.bf16.msra.mxu1 %v2292_v12 }
  0x9a   : > { %1991 = vmatprep.subr.bf16.mxu1 %v2294_v20 }
  0x9b   : > { %1972 = vmatpush3.bf16.msra.mxu0 %v2279_v9 }
  0x9c   : > { %1973 = vmatprep.subr.bf16.mxu0 %v2280_v11 }
  0x9d   : > { %1992 = vmatpush3.bf16.msra.mxu1 %v2294_v20 }
  0x9e   : > { %1993 = vmatprep.subr.bf16.mxu1 %v2296_v22 }
  0x9f   : > { %1974 = vmatpush3.bf16.msra.mxu0 %v2280_v11 }
  0xa0   : > { %1975 = vmatprep.subr.bf16.mxu0 %v2281_v13 }
  0xa1   : > { %1994 = vmatpush3.bf16.msra.mxu1 %v2296_v22 }
  0xa2   : > { %1995 = vmatprep.subr.bf16.mxu1 %v2298_v24 }
  0xa3   : > { %1976 = vmatpush3.bf16.msra.mxu0 %v2281_v13 }
  0xa4   : > { %2009 = vmatprep.subr.bf16.mxu0 %v2285_v14 }
  0xa5   : > { %1996 = vmatpush3.bf16.msra.mxu1 %v2298_v24 }
  0xa6   : > { %1978 = vmatmul.mubr.bf16.vlgmr.msra.gmra.mxu0 %v2283_v15  ;;  %2037 = vmatprep.subr.bf16.mxu1 %v2300_v26 }
  0xa7   : > { %2010 = vmatpush3.bf16.msra.mxu0 %v2285_v14 }
  0xa8   : > { %2011 = vmatprep.subr.bf16.mxu0 %v2287_v16 }
  0xab   : > { %2012 = vmatpush3.bf16.msra.mxu0 %v2287_v16 }
  0xac   : > { %2013 = vmatprep.subr.bf16.mxu0 %v2289_v17 }
  0xaf   : > { %2014 = vmatpush3.bf16.msra.mxu0 %v2289_v17  ;;  %v669_v17 = vsub.s32 2, %v2846_v28 }
  0xb0   : > { %2015 = vmatprep.subr.bf16.mxu0 %v2291_v18 }
  0xb3   : > { %2016 = vmatpush3.bf16.msra.mxu0 %v2291_v18 }
  0xb4   : > { %2017 = vmatprep.subr.bf16.mxu0 %v2293_v19 }
  0xb7   : > { %2018 = vmatpush3.bf16.msra.mxu0 %v2293_v19 }
  0xb8   : > { %2019 = vmatprep.subr.bf16.mxu0 %v2295_v21 }
  0xbb   : > { %2020 = vmatpush3.bf16.msra.mxu0 %v2295_v21  ;;  %v670_v21 = vrot.slane %v2849_v30, %v669_v17 }
  0xbc   : > { %2021 = vmatprep.subr.bf16.mxu0 %v2297_v23 }
  0xbf   : > { %2022 = vmatpush3.bf16.msra.mxu0 %v2297_v23 }
  0xc0   : > { %2023 = vmatprep.subr.bf16.mxu0 %v2299_v25 }
  0xc3   : > { %2024 = vmatpush3.bf16.msra.mxu0 %v2299_v25 }
 0x166   : > { %v1979_v31 = vpop.f32.mrf.mxu0 }
 0x167   : > { %v456_v37 = vadd.f32 %v1979_v31, %v352_v32 }
 0x168   : > { %v447_v33 = vpop.f32.mrf.mxu0 }
 0x169   : > { %v448_v35 = vadd.f32 %v447_v33, %v352_v32  ;;  %v464_v43 = vmax.f32 %v456_v37, 0.0 }
 0x16a   : > { %v1980_v34 = vpop.f32.mrf.mxu0 }
 0x16b   : > { %v459_v36 = vadd.f32 %v1980_v34, %v352_v32  ;;  %v462_v41 = vmax.f32 %v448_v35, 0.0 }
 0x16c   : > { %v450_v38 = vpop.f32.mrf.mxu0 }
 0x16d   : > { %v451_v39 = vadd.f32 %v450_v38, %v352_v32  ;;  %v465_v40 = vmax.f32 %v459_v36, 0.0 }
 0x16f   : > { %v463_v42 = vmax.f32 %v451_v39, 0.0  ;;  %v467_v46 = vpack.c.bf16 %v465_v40, %v464_v43 }
 0x171   : > { %v466_v44 = vpack.c.bf16 %v463_v42, %v462_v41 }
 0x173   : > { %1997 = vmatprep.mubr.bf16.mxu1 %v466_v44  ;;  %2025 = vmatprep.mubr.bf16.mxu0 %v466_v44 }
 0x174   : > { %1998 = vmatmul.mubr.bf16.vlgmr.msra.gmra.mxu1 %v467_v46  ;;  %2026 = vmatmul.mubr.bf16.vlgmr.msra.gmra.mxu0 %v467_v46 }
 0x175   : > { %2038 = vmatpush3.bf16.msra.mxu1 %v2300_v26  ;;  %2001 = vmatprep.mubr.bf16.mxu1 %v2302_v45 }
 0x176   : > { %2039 = vmatprep.subr.bf16.mxu1 %v2301_v47  ;;  %2029 = vmatprep.mubr.bf16.mxu0 %v2302_v45 }
 0x179   : > { %2040 = vmatpush3.bf16.msra.mxu1 %v2301_v47 }
 0x17a   : > { %2041 = vmatprep.subr.bf16.mxu1 %v2303_v48 }
 0x17c   : > { %2002 = vmatmul.mubr.bf16.gmra.mxu1 %v2304_v49  ;;  %2030 = vmatmul.mubr.bf16.gmra.mxu0 %v2304_v49 }
 0x17d   : > { %2042 = vmatpush3.bf16.msra.mxu1 %v2303_v48  ;;  %2005 = vmatprep.mubr.bf16.mxu1 %v2306_v50 }
 0x17e   : > { %2043 = vmatprep.subr.bf16.mxu1 %v2305_v51  ;;  %2033 = vmatprep.mubr.bf16.mxu0 %v2306_v50 }
 0x181   : > { %2044 = vmatpush3.bf16.msra.mxu1 %v2305_v51 }
 0x182   : > { %2045 = vmatprep.subr.bf16.mxu1 %v2307_v52 }
 0x184   : > { %2006 = vmatmul.mubr.bf16.gmra.mxu1 %v2308_v53  ;;  %2034 = vmatmul.mubr.bf16.gmra.mxu0 %v2308_v53 }
 0x185   : > { %2046 = vmatpush3.bf16.msra.mxu1 %v2307_v52  ;;  %2053 = vmatprep.mubr.bf16.mxu1 %v466_v44 }
 0x186   : > { %2047 = vmatprep.subr.bf16.mxu1 %v2309_v54 }
 0x189   : > { %2048 = vmatpush3.bf16.msra.mxu1 %v2309_v54 }
 0x18a   : > { %2049 = vmatprep.subr.bf16.mxu1 %v2310_v55 }
 0x18d   : > { %2050 = vmatpush3.bf16.msra.mxu1 %v2310_v55 }
 0x18e   : > { %2051 = vmatprep.subr.bf16.mxu1 %v2311_v56 }
 0x191   : > { %2052 = vmatpush3.bf16.msra.mxu1 %v2311_v56 }
 0x194   : > { %2054 = vmatmul.mubr.bf16.vlgmr.msra.gmra.mxu1 %v467_v46 }
 0x195   : > { %2057 = vmatprep.mubr.bf16.mxu1 %v2302_v45 }
 0x19c   : > { %2058 = vmatmul.mubr.bf16.gmra.mxu1 %v2304_v49  ;;  %v819_v49 = vsub.s32 3, %v2846_v28 }
 0x19d   : > { %2061 = vmatprep.mubr.bf16.mxu1 %v2306_v50 }
 0x19e   : > { %v820_v54 = vrot.slane %v2849_v30, %v819_v49 }
 0x1a4   : > { %2062 = vmatmul.mubr.bf16.gmra.mxu1 %v2308_v53 }
 0x234   : > { %v1999_v58 = vpop.f32.mrf.mxu1  ;;  %v2027_v59 = vpop.f32.mrf.mxu0 }
 0x235   : > { %v2863_v1 = vadd.f32 %v1999_v58, %v2858_v60  ;;  %v762_v51 = vadd.f32 %v2027_v59, %v670_v21 }
 0x236   : > { %v603_v61 = vpop.f32.mrf.mxu1  ;;  %v2860_v62 = vpop.f32.mrf.mxu0 }
 0x237   : > { %v604_v5 = vadd.f32 %v603_v61, %v2858_v60 }
 0x238   : > { %v2000_v63 = vpop.f32.mrf.mxu1  ;;  %v2028_v0 = vpop.f32.mrf.mxu0 }
 0x239   : > { %v2866_v2 = vadd.f32 %v2000_v63, %v2858_v60  ;;  %v765_v48 = vadd.f32 %v2028_v0, %v670_v21 }
 0x23a   : > { %v606_v3 = vpop.f32.mrf.mxu1  ;;  %v756_v4 = vpop.f32.mrf.mxu0 }
 0x23b   : > { %v951_v6 = vpack.c.bf16 %v2866_v2, %v2863_v1  ;;  %v607_v7 = vadd.f32 %v606_v3, %v2858_v60  ;;  %v957_v53 = vpack.c.bf16 %v765_v48, %v762_v51  ;;  %v757_v58 = vadd.f32 %v756_v4, %v670_v21  ;;  %v967_v51 = vld [vmem:[#allocation7 + $0x28] sm:$0xff] }
 0x23c   : > { %v2031_v8 = vpop.f32.mrf.mxu0  ;;  %v2872_v9 = vpop.f32.mrf.mxu1  ;;  %v754_v3 = vadd.f32 %v2860_v62, %v670_v21 }
 0x23d   : > { %v950_v10 = vpack.c.bf16 %v607_v7, %v604_v5  ;;  %v778_v36 = vadd.f32 %v2031_v8, %v670_v21 }
 0x23e   : > { %v769_v11 = vpop.f32.mrf.mxu0  ;;  %v2874_v12 = vpop.f32.mrf.mxu1  ;;  %v956_v59 = vpack.c.bf16 %v757_v58, %v754_v3  ;;  %v970_v58 = vld [vmem:[#allocation7 + $0x40] sm:$0xff] }
 0x23f   : > { %2077 = vmatprep.mubr.bf16.mxu0 %v950_v10  ;;  %v770_v43 = vadd.f32 %v769_v11, %v670_v21  ;;  %v620_v62 = vadd.f32 %v2874_v12, %v2858_v60 }
 0x240   : > { %v2032_v13 = vpop.f32.mrf.mxu0  ;;  %v2876_v14 = vpop.f32.mrf.mxu1 }
 0x241   : > { %v781_v35 = vadd.f32 %v2032_v13, %v670_v21 }
 0x242   : > { %v772_v15 = vpop.f32.mrf.mxu0  ;;  %v2878_v16 = vpop.f32.mrf.mxu1 }
 0x243   : > { %v959_v38 = vpack.c.bf16 %v781_v35, %v778_v36  ;;  %v773_v41 = vadd.f32 %v772_v15, %v670_v21 }
 0x244   : > { %v2035_v18 = vpop.f32.mrf.mxu0  ;;  %v2881_v19 = vpop.f32.mrf.mxu1 }
 0x245   : > { %v794_v24 = vadd.f32 %v2035_v18, %v670_v21  ;;  %v958_v45 = vpack.c.bf16 %v773_v41, %v770_v43  ;;  %v644_v1 = vadd.f32 %v2881_v19, %v2858_v60  ;;  %v963_v41 = vld [vmem:[#allocation7 + $0x8] sm:$0xff] }
 0x246   : > { %v785_v20 = vpop.f32.mrf.mxu0  ;;  %v2884_v23 = vpop.f32.mrf.mxu1 }
 0x247   : > { %v786_v27 = vadd.f32 %v785_v20, %v670_v21  ;;  %v623_v20 = vadd.f32 %v2878_v16, %v2858_v60  ;;  %v636_v12 = vadd.f32 %v2884_v23, %v2858_v60  ;;  %v964_v23 = vld [vmem:[#allocation7 + $0x10] sm:$0xff] }
 0x248   : > { %v2036_v22 = vpop.f32.mrf.mxu0  ;;  %v2886_v32 = vpop.f32.mrf.mxu1 }
 0x249   : > { %v797_v25 = vadd.f32 %v2036_v22, %v670_v21  ;;  %v647_v2 = vadd.f32 %v2886_v32, %v2858_v60 }
 0x24a   : > { %v788_v26 = vpop.f32.mrf.mxu0  ;;  %v2888_v34 = vpop.f32.mrf.mxu1 }
 0x24b   : > { %v961_v29 = vpack.c.bf16 %v797_v25, %v794_v24  ;;  %v789_v31 = vadd.f32 %v788_v26, %v670_v21  ;;  %v952_v25 = vpack.c.bf16 %v623_v20, %v620_v62  ;;  %v639_v16 = vadd.f32 %v2888_v34, %v2858_v60 }
 0x24d   : > { %v960_v33 = vpack.c.bf16 %v789_v31, %v786_v27  ;;  %2065 = vmatprep.subr.bf16.mxu0 %v961_v29  ;;  %v631_v31 = vadd.f32 %v2876_v14, %v2858_v60 }
 0x24e   : > { %2066 = vmatpush3.bf16.xpose.msra.mxu0 %v961_v29  ;;  %v628_v29 = vadd.f32 %v2872_v9, %v2858_v60  ;;  %v962_v9 = vld [vmem:[#allocation7] sm:$0xff] }
 0x24f   : > { %2067 = vmatprep.subr.bf16.mxu0 %v960_v33 }
 0x250   : > { %v953_v35 = vpack.c.bf16 %v631_v31, %v628_v29 }
 0x254   : > { %v2055_v37 = vpop.f32.mrf.mxu1 }
 0x255   : > { %v912_v21 = vadd.f32 %v2055_v37, %v820_v54  ;;  %v965_v37 = vld [vmem:[#allocation7 + $0x18] sm:$0xff] }
 0x256   : > { %v903_v39 = vpop.f32.mrf.mxu1  ;;  %2068 = vmatpush3.bf16.xpose.msra.mxu0 %v960_v33  ;;  %v954_v33 = vpack.c.bf16 %v639_v16, %v636_v12 }
 0x257   : > { %2069 = vmatprep.subr.bf16.mxu0 %v959_v38  ;;  %v904_v26 = vadd.f32 %v903_v39, %v820_v54 }
 0x258   : > { %v2056_v40 = vpop.f32.mrf.mxu1 }
 0x259   : > { %v915_v18 = vadd.f32 %v2056_v40, %v820_v54 }
 0x25a   : > { %v906_v42 = vpop.f32.mrf.mxu1 }
 0x25b   : > { %v1195_v22 = vpack.c.bf16 %v915_v18, %v912_v21  ;;  %v907_v24 = vadd.f32 %v906_v42, %v820_v54 }
 0x25c   : > { %v2059_v44 = vpop.f32.mrf.mxu1 }
 0x25d   : > { %v928_v0 = vadd.f32 %v2059_v44, %v820_v54  ;;  %v1194_v27 = vpack.c.bf16 %v907_v24, %v904_v26 }
 0x25e   : > { %v919_v46 = vpop.f32.mrf.mxu1  ;;  %2070 = vmatpush3.bf16.xpose.msra.mxu0 %v959_v38 }
 0x25f   : > { %2071 = vmatprep.subr.bf16.mxu0 %v958_v45  ;;  %v920_v13 = vadd.f32 %v919_v46, %v820_v54 }
 0x260   : > { %v2060_v47 = vpop.f32.mrf.mxu1 }
 0x261   : > { %v931_v7 = vadd.f32 %v2060_v47, %v820_v54  ;;  %v968_v47 = vld [vmem:[#allocation7 + $0x30] sm:$0xff] }
 0x262   : > { %v922_v50 = vpop.f32.mrf.mxu1 }
 0x263   : > { %v1197_v15 = vpack.c.bf16 %v931_v7, %v928_v0  ;;  %v923_v17 = vadd.f32 %v922_v50, %v820_v54 }
 0x264   : > { %v2063_v52 = vpop.f32.mrf.mxu1 }
 0x265   : > { %v944_v56 = vadd.f32 %v2063_v52, %v820_v54  ;;  %v1196_v4 = vpack.c.bf16 %v923_v17, %v920_v13 }
 0x266   : > { %v935_v55 = vpop.f32.mrf.mxu1  ;;  %2072 = vmatpush3.bf16.xpose.msra.mxu0 %v958_v45  ;;  %v966_v45 = vld [vmem:[#allocation7 + $0x20] sm:$0xff] }
 0x267   : > { %2073 = vmatprep.subr.bf16.mxu0 %v957_v53  ;;  %v936_v61 = vadd.f32 %v935_v55, %v820_v54 }
 0x268   : > { %v2064_v57 = vpop.f32.mrf.mxu1 }
 0x269   : > { %v947_v63 = vadd.f32 %v2064_v57, %v820_v54 }
 0x26a   : > { %v938_v5 = vpop.f32.mrf.mxu1 }
 0x26b   : > { %v1199_v8 = vpack.c.bf16 %v947_v63, %v944_v56  ;;  %v939_v10 = vadd.f32 %v938_v5, %v820_v54  ;;  %v969_v54 = vld [vmem:[#allocation7 + $0x38] sm:$0xff]  ;;  %v972_v5 = vld [vmem:[#allocation7 + $0x50] sm:$0xff] }
 0x26d   : > { %v1198_v11 = vpack.c.bf16 %v939_v10, %v936_v61  ;;  %2089 = vmatprep.subr.bf16.mxu1 %v1199_v8  ;;  %v971_v10 = vld [vmem:[#allocation7 + $0x48] sm:$0xff] }
 0x26e   : > { %2090 = vmatpush3.bf16.msra.mxu1 %v1199_v8  ;;  %2074 = vmatpush3.bf16.xpose.msra.mxu0 %v957_v53 }
 0x26f   : > { %2075 = vmatprep.subr.bf16.mxu0 %v956_v59  ;;  %2091 = vmatprep.subr.bf16.mxu1 %v1198_v11 }
 0x272   : > { %2092 = vmatpush3.bf16.msra.mxu1 %v1198_v11 }
 0x273   : > { %2093 = vmatprep.subr.bf16.mxu1 %v1197_v15 }
 0x276   : > { %2094 = vmatpush3.bf16.msra.mxu1 %v1197_v15  ;;  %2076 = vmatpush3.bf16.xpose.msra.mxu0 %v956_v59  ;;  %v973_v15 = vld [vmem:[#allocation7 + $0x58] sm:$0xff] }
 0x277   : > { %2095 = vmatprep.subr.bf16.mxu1 %v1196_v4 }
 0x27a   : > { %2096 = vmatpush3.bf16.msra.mxu1 %v1196_v4 }
 0x27b   : > { %2097 = vmatprep.subr.bf16.mxu1 %v1195_v22 }
 0x27d   : > { %2078 = vmatmul.mubr.bf16.vlgmr.msra.gmra.mxu0 %v951_v6  ;;  %v955_v6 = vpack.c.bf16 %v647_v2, %v644_v1 }
 0x27e   : > { %2098 = vmatpush3.bf16.msra.mxu1 %v1195_v22  ;;  %2081 = vmatprep.mubr.bf16.mxu0 %v952_v25 }
 0x27f   : > { %2099 = vmatprep.subr.bf16.mxu1 %v1194_v27 }
 0x282   : > { %2100 = vmatpush3.bf16.msra.mxu1 %v1194_v27 }
 0x285   : > { %2082 = vmatmul.mubr.bf16.gmra.mxu0 %v953_v35 }
 0x286   : > { %2085 = vmatprep.mubr.bf16.mxu0 %v954_v33 }
 0x28d   : > { %2086 = vmatmul.mubr.bf16.gmra.mxu0 %v955_v6 }
 0x33d   : > { %v2079_v34 = vpop.f32.mrf.mxu0 }
 0x33e   : > { %v1017_v36 = vadd.f32 %v2079_v34, %v964_v23 }
 0x33f   : > { %v1008_v14 = vpop.f32.mrf.mxu0 }
 0x340   : > { %v1009_v38 = vadd.f32 %v1008_v14, %v962_v9  ;;  %v1062_v39 = vsel %vm1055_vm0, %v1017_v36, -inf }
 0x341   : > { %1063 = vmax.xlane.f32.xlu1 %v1062_v39  ;;  %v2080_v40 = vpop.f32.mrf.mxu0 }
 0x342   : > { %v1020_v42 = vadd.f32 %v2080_v40, %v965_v37  ;;  %v1056_v19 = vsel %vm1055_vm0, %v1009_v38, -inf }
 0x343   : > { %v1011_v43 = vpop.f32.mrf.mxu0  ;;  %1057 = vmax.xlane.f32.xlu0 %v1056_v19 }
 0x344   : > { %v1012_v60 = vadd.f32 %v1011_v43, %v963_v41  ;;  %v1065_v32 = vsel %vm1055_vm0, %v1020_v42, -inf }
 0x345   : > { %1066 = vmax.xlane.f32.xlu1 %v1065_v32  ;;  %v2083_v44 = vpop.f32.mrf.mxu0 }
 0x346   : > { %v1059_v46 = vsel %vm1055_vm0, %v1012_v60, -inf  ;;  %v1033_v52 = vadd.f32 %v2083_v44, %v968_v47 }
 0x347   : > { %v1024_v48 = vpop.f32.mrf.mxu0  ;;  %1060 = vmax.xlane.f32.xlu0 %v1059_v46 }
 0x348   : > { %v1025_v49 = vadd.f32 %v1024_v48, %v966_v45  ;;  %v1074_v3 = vsel %vm1055_vm0, %v1033_v52, -inf }
 0x349   : > { %v2084_v50 = vpop.f32.mrf.mxu0 }
 0x34a   : > { %v1068_v53 = vsel %vm1055_vm0, %v1025_v49, -inf  ;;  %v1036_v61 = vadd.f32 %v2084_v50, %v969_v54 }
 0x34b   : > { %v1027_v55 = vpop.f32.mrf.mxu0  ;;  %1069 = vmax.xlane.f32.xlu0 %v1068_v53 }
 0x34c   : > { %v1028_v56 = vadd.f32 %v1027_v55, %v967_v51  ;;  %v1077_v11 = vsel %vm1055_vm0, %v1036_v61, -inf }
 0x34d   : > { %v2087_v57 = vpop.f32.mrf.mxu0 }
 0x34e   : > { %v1071_v63 = vsel %vm1055_vm0, %v1028_v56, -inf  ;;  %v1049_v59 = vadd.f32 %v2087_v57, %v972_v5 }
 0x34f   : > { %v1040_v0 = vpop.f32.mrf.mxu0  ;;  %1072 = vmax.xlane.f32.xlu1 %v1071_v63  ;;  %1075 = vmax.xlane.f32.xlu0 %v1074_v3 }
 0x350   : > { %v1041_v7 = vadd.f32 %v1040_v0, %v970_v58  ;;  %v1086_v20 = vsel %vm1055_vm0, %v1049_v59, -inf }
 0x351   : > { %v2088_v8 = vpop.f32.mrf.mxu0 }
 0x352   : > { %v1080_v13 = vsel %vm1055_vm0, %v1041_v7, -inf  ;;  %v2921_v18 = vadd.f32 %v2088_v8, %v973_v15 }
 0x353   : > { %v1043_v17 = vpop.f32.mrf.mxu0  ;;  %1078 = vmax.xlane.f32.xlu1 %v1077_v11  ;;  %1081 = vmax.xlane.f32.xlu0 %v1080_v13 }
 0x354   : > { %v1044_v4 = vadd.f32 %v1043_v17, %v971_v10  ;;  %v1089_v21 = vsel %vm1055_vm0, %v2921_v18, -inf }
 0x356   : > { %v1083_v62 = vsel %vm1055_vm0, %v1044_v4, -inf }
 0x357   : > { %1084 = vmax.xlane.f32.xlu1 %v1083_v62  ;;  %1087 = vmax.xlane.f32.xlu0 %v1086_v20  ;;  %v2312_v20 = vld [vmem:[#allocation8 + $0x138] sm:$0xff]  }
 0x358   : > { %2113 = vmatprep.subr.bf16.mxu1 %v2312_v20 }
 0x35b   : > { %1090 = vmax.xlane.f32.xlu1 %v1089_v21 }
 0x3ca   : > { %v1064_v22 = vpop.xlane.xlu1 %1063 }
 0x3cb   : > { %v1094_v24 = vsub.f32 %v1017_v36, %v1064_v22 }
 0x3cc   : > { %v1058_v25 = vpop.xlane.xlu0 %1057 }
 0x3cd   : > { %v1092_v26 = vsub.f32 %v1009_v38, %v1058_v25  ;;  %v1108_v12 = vmul.f32 1.442695, %v1094_v24 }
 0x3ce   : > { %v1067_v27 = vpop.xlane.xlu1 %1066 }
 0x3cf   : > { %v1104_v16 = vmul.f32 1.442695, %v1092_v26  ;;  %v1095_v29 = vsub.f32 %v1020_v42, %v1067_v27 }
 0x3d0   : > { %v1061_v31 = vpop.xlane.xlu0 %1060 }
 0x3d1   : > { %2328 = vpow2.f32 %v1104_v16  ;;  %v1093_v33 = vsub.f32 %v1012_v60, %v1061_v31  ;;  %v1110_v35 = vmul.f32 1.442695, %v1095_v29 }
 0x3d2   : > { %2330 = vpow2.f32 %v1108_v12 }
 0x3d3   : > { %v1106_v1 = vmul.f32 1.442695, %v1093_v33 }
 0x3d4   : > { %v1070_v2 = vpop.xlane.xlu0 %1069 }
 0x3d5   : > { %2332 = vpow2.f32 %v1106_v1  ;;  %v1096_v6 = vsub.f32 %v1025_v49, %v1070_v2 }
 0x3d6   : > { %2334 = vpow2.f32 %v1110_v35 }
 0x3d7   : > { %v1112_v23 = vmul.f32 1.442695, %v1096_v6 }
 0x3d8   : > { %v1073_v34 = vpop.xlane.xlu1 %1072  ;;  %v1076_v9 = vpop.xlane.xlu0 %1075 }
 0x3d9   : > { %2336 = vpow2.f32 %v1112_v23  ;;  %v1097_v36 = vsub.f32 %v1028_v56, %v1073_v34  ;;  %v1098_v14 = vsub.f32 %v1033_v52, %v1076_v9 }
 0x3db   : > { %v1114_v37 = vmul.f32 1.442695, %v1097_v36  ;;  %v1116_v38 = vmul.f32 1.442695, %v1098_v14 }
 0x3dc   : > { %v1079_v39 = vpop.xlane.xlu1 %1078  ;;  %v1082_v40 = vpop.xlane.xlu0 %1081 }
 0x3dd   : > { %2338 = vpow2.f32 %v1114_v37  ;;  %v1099_v41 = vsub.f32 %v1036_v61, %v1079_v39  ;;  %v1100_v42 = vsub.f32 %v1041_v7, %v1082_v40  ;;  %v2313_v40 = vld [vmem:[#allocation8 + $0x130] sm:$0xff]  }
 0x3de   : > { %v2927_v19 = vpop.eup %2328  ;;  %2340 = vpow2.f32 %v1116_v38 }
 0x3df   : > { %v1118_v43 = vmul.f32 1.442695, %v1099_v41  ;;  %v1120_v60 = vmul.f32 1.442695, %v1100_v42  ;;  %v1128_v32 = vsel %vm1055_vm0, %v2927_v19, 0.0  ;;  %v2931_v44 = vpop.eup %2330 }
 0x3e0   : > { %v1085_v45 = vpop.xlane.xlu1 %1084  ;;  %1129 = vadd.xlane.f32.xlu0 %v1128_v32  ;;  %v1088_v46 = vpop.xlane.xlu0 %1087  ;;  %v1134_v52 = vsel %vm1055_vm0, %v2931_v44, 0.0  ;;  %v2314_v32 = vld [vmem:[#allocation8 + $0x128] sm:$0xff]  }
 0x3e1   : > { %2342 = vpow2.f32 %v1118_v43  ;;  %v1101_v47 = vsub.f32 %v1044_v4, %v1085_v45  ;;  %v1102_v48 = vsub.f32 %v1049_v59, %v1088_v46 }
 0x3e2   : > { %v2933_v49 = vpop.eup %2332  ;;  %2344 = vpow2.f32 %v1120_v60 }
 0x3e3   : > { %v1122_v50 = vmul.f32 1.442695, %v1101_v47  ;;  %v1124_v51 = vmul.f32 1.442695, %v1102_v48  ;;  %v1131_v53 = vsel %vm1055_vm0, %v2933_v49, 0.0  ;;  %v2939_v54 = vpop.eup %2334 }
 0x3e4   : > { %v1091_v55 = vpop.xlane.xlu1 %1090  ;;  %1135 = vadd.xlane.f32.xlu0 %v1134_v52  ;;  %1132 = vadd.xlane.f32.xlu1 %v1131_v53  ;;  %v1137_v61 = vsel %vm1055_vm0, %v2939_v54, 0.0 }
 0x3e5   : > { %2346 = vpow2.f32 %v1122_v50  ;;  %v1103_v56 = vsub.f32 %v2921_v18, %v1091_v55  ;;  %v2316_v55 = vld [vmem:[#allocation8 + $0x118] sm:$0xff]  }
 0x3e6   : > { %v2942_v57 = vpop.eup %2336  ;;  %2348 = vpow2.f32 %v1124_v51 }
 0x3e7   : > { %v1126_v58 = vmul.f32 1.442695, %v1103_v56  ;;  %v1140_v63 = vsel %vm1055_vm0, %v2942_v57, 0.0 }
 0x3e8   : > { %1138 = vadd.xlane.f32.xlu1 %v1137_v61  ;;  %1141 = vadd.xlane.f32.xlu0 %v1140_v63  ;;  %v2317_v63 = vld [vmem:[#allocation8 + $0x110] sm:$0xff]  }
 0x3e9   : > { %2350 = vpow2.f32 %v1126_v58 }
 0x3ea   : > { %v2948_v3 = vpop.eup %2338 }
 0x3eb   : > { %v2950_v5 = vpop.eup %2340  ;;  %v1143_v0 = vsel %vm1055_vm0, %v2948_v3, 0.0 }
 0x3ec   : > { %1144 = vadd.xlane.f32.xlu1 %v1143_v0  ;;  %v1146_v7 = vsel %vm1055_vm0, %v2950_v5, 0.0  ;;  %v2320_v0 = vld [vmem:[#allocation8 + $0x178] sm:$0xff]  }
 0x3ed   : > { %1147 = vadd.xlane.f32.xlu0 %v1146_v7  ;;  %v2321_v7 = vld [vmem:[#allocation8 + $0x170] sm:$0xff]   ;;  %2141 = vmatprep.subr.bf16.mxu0 %v2320_v0 }
 0x3ee   : > { %v2956_v8 = vpop.eup %2342  ;;  %2142 = vmatpush3.bf16.msra.mxu0 %v2320_v0 }
 0x3ef   : > { %v2958_v10 = vpop.eup %2344  ;;  %v1149_v59 = vsel %vm1055_vm0, %v2956_v8, 0.0  ;;  %2143 = vmatprep.subr.bf16.mxu0 %v2321_v7 }
 0x3f0   : > { %1150 = vadd.xlane.f32.xlu1 %v1149_v59  ;;  %v1152_v11 = vsel %vm1055_vm0, %v2958_v10, 0.0  ;;  %v2324_v59 = vld [vmem:[#allocation8 + $0x158] sm:$0xff]  }
 0x3f1   : > { %1153 = vadd.xlane.f32.xlu0 %v1152_v11 }
 0x3f2   : > { %v2964_v13 = vpop.eup %2346  ;;  %2144 = vmatpush3.bf16.msra.mxu0 %v2321_v7 }
 0x3f3   : > { %v2966_v15 = vpop.eup %2348  ;;  %v1155_v17 = vsel %vm1055_vm0, %v2964_v13, 0.0 }
 0x3f4   : > { %1156 = vadd.xlane.f32.xlu1 %v1155_v17  ;;  %v1158_v4 = vsel %vm1055_vm0, %v2966_v15, 0.0 }
 0x3f5   : > { %1159 = vadd.xlane.f32.xlu0 %v1158_v4 }
 0x3f6   : > { %v2972_v18 = vpop.eup %2350 }
 0x3f7   : > { %v1161_v62 = vsel %vm1055_vm0, %v2972_v18, 0.0 }
 0x3f8   : > { %1162 = vadd.xlane.f32.xlu1 %v1161_v62 }
 0x469   : > { %v1130_v21 = vpop.xlane.xlu0 %1129 }
 0x46a   : > { %2352 = vrcp.f32 %v1130_v21 }
 0x46d   : > { %v1133_v22 = vpop.xlane.xlu1 %1132  ;;  %v1136_v24 = vpop.xlane.xlu0 %1135 }
 0x46e   : > { %2354 = vrcp.f32 %v1133_v22 }
 0x46f   : > { %2356 = vrcp.f32 %v1136_v24 }
 0x471   : > { %v1139_v25 = vpop.xlane.xlu1 %1138  ;;  %v1142_v26 = vpop.xlane.xlu0 %1141 }
 0x472   : > { %2358 = vrcp.f32 %v1139_v25 }
 0x473   : > { %2360 = vrcp.f32 %v1142_v26 }
 0x475   : > { %v1145_v27 = vpop.xlane.xlu1 %1144 }
 0x476   : > { %2362 = vrcp.f32 %v1145_v27  ;;  %v1148_v12 = vpop.xlane.xlu0 %1147 }
 0x477   : > { %2364 = vrcp.f32 %v1148_v12  ;;  %v2353_v16 = vpop.eup %2352 }
 0x478   : > { %v1165_v35 = vmul.f32 %v2353_v16, %v2927_v19 }
 0x479   : > { %v1151_v29 = vpop.xlane.xlu1 %1150 }
 0x47a   : > { %2366 = vrcp.f32 %v1151_v29  ;;  %v1154_v31 = vpop.xlane.xlu0 %1153 }
 0x47b   : > { %v2355_v33 = vpop.eup %2354  ;;  %2368 = vrcp.f32 %v1154_v31 }
 0x47c   : > { %v1167_v1 = vmul.f32 %v2355_v33, %v2933_v49  ;;  %v2357_v2 = vpop.eup %2356  ;;  %v2315_v49 = vld [vmem:[#allocation8 + $0x120] sm:$0xff]   ;;  %v2325_v33 = vld [vmem:[#allocation8 + $0x150] sm:$0xff]  }
 0x47d   : > { %v1157_v6 = vpop.xlane.xlu1 %1156  ;;  %v1169_v36 = vmul.f32 %v2357_v2, %v2931_v44  ;;  %v1324_v2 = vsub.s32 4, %v2846_v28 }
 0x47e   : > { %2370 = vrcp.f32 %v1157_v6  ;;  %v1160_v23 = vpop.xlane.xlu0 %1159  ;;  %v1188_v34 = vpack.c.bf16 %v1167_v1, %v1165_v35  ;;  %v2326_v35 = vld [vmem:[#allocation8 + $0x148] sm:$0xff]   ;;  %v2327_v1 = vld [vmem:[#allocation8 + $0x140] sm:$0xff]  }
 0x47f   : > { %v2359_v9 = vpop.eup %2358  ;;  %2372 = vrcp.f32 %v1160_v23  ;;  %v1325_v23 = vrot.slane %v2849_v30, %v1324_v2 }
 0x480   : > { %v1171_v14 = vmul.f32 %v2359_v9, %v2939_v54  ;;  %2101 = vmatprep.mubr.msk.bf16.mxu1 %vm1055_vm0, %v1188_v34  ;;  %v2361_v37 = vpop.eup %2360 }
 0x481   : > { %v1163_v38 = vpop.xlane.xlu1 %1162  ;;  %v1173_v42 = vmul.f32 %v2361_v37, %v2942_v57 }
 0x482   : > { %v1189_v39 = vpack.c.bf16 %v1171_v14, %v1169_v36  ;;  %2374 = vrcp.f32 %v1163_v38 }
 0x483   : > { %v2363_v41 = vpop.eup %2362 }
 0x484   : > { %2102 = vmatmul.mubr.msk.bf16.vlgmr.msra.gmra.mxu1 %vm1055_vm0, %v1189_v39  ;;  %v1175_v19 = vmul.f32 %v2363_v41, %v2948_v3  ;;  %v2365_v43 = vpop.eup %2364  ;;  %v2318_v3 = vld [vmem:[#allocation8 + $0x108] sm:$0xff]  }
 0x485   : > { %2114 = vmatpush3.bf16.msra.mxu1 %v2312_v20  ;;  %v1177_v45 = vmul.f32 %v2365_v43, %v2950_v5  ;;  %v2319_v5 = vld [vmem:[#allocation8 + $0x100] sm:$0xff]  }
 0x486   : > { %v1190_v60 = vpack.c.bf16 %v1175_v19, %v1173_v42  ;;  %2115 = vmatprep.subr.bf16.mxu1 %v2313_v40 }
 0x487   : > { %v2367_v44 = vpop.eup %2366 }
 0x488   : > { %2105 = vmatprep.mubr.msk.bf16.mxu1 %vm1055_vm0, %v1190_v60  ;;  %v1179_v46 = vmul.f32 %v2367_v44, %v2956_v8  ;;  %v2369_v47 = vpop.eup %2368  ;;  %v2322_v8 = vld [vmem:[#allocation8 + $0x168] sm:$0xff]  }
 0x489   : > { %2116 = vmatpush3.bf16.msra.mxu1 %v2313_v40  ;;  %v1181_v51 = vmul.f32 %v2369_v47, %v2958_v10  ;;  %2145 = vmatprep.subr.bf16.mxu0 %v2322_v8  ;;  %v2323_v10 = vld [vmem:[#allocation8 + $0x160] sm:$0xff]  }
 0x48a   : > { %v1191_v48 = vpack.c.bf16 %v1179_v46, %v1177_v45  ;;  %2117 = vmatprep.subr.bf16.mxu1 %v2314_v32  ;;  %2146 = vmatpush3.bf16.msra.mxu0 %v2322_v8 }
 0x48b   : > { %v2371_v50 = vpop.eup %2370  ;;  %2147 = vmatprep.subr.bf16.mxu0 %v2323_v10 }
 0x48c   : > { %2106 = vmatmul.mubr.msk.bf16.gmra.mxu1 %vm1055_vm0, %v1191_v48  ;;  %v1183_v52 = vmul.f32 %v2371_v50, %v2964_v13  ;;  %v2373_v53 = vpop.eup %2372 }
 0x48d   : > { %2118 = vmatpush3.bf16.msra.mxu1 %v2314_v32  ;;  %v1185_v57 = vmul.f32 %v2373_v53, %v2966_v15 }
 0x48e   : > { %v1192_v54 = vpack.c.bf16 %v1183_v52, %v1181_v51  ;;  %2119 = vmatprep.subr.bf16.mxu1 %v2315_v49  ;;  %2148 = vmatpush3.bf16.msra.mxu0 %v2323_v10 }
 0x48f   : > { %v2375_v56 = vpop.eup %2374  ;;  %2149 = vmatprep.subr.bf16.mxu0 %v2324_v59 }
 0x490   : > { %2109 = vmatprep.mubr.msk.bf16.mxu1 %vm1055_vm0, %v1192_v54  ;;  %v1187_v58 = vmul.f32 %v2375_v56, %v2972_v18 }
 0x491   : > { %2120 = vmatpush3.bf16.msra.mxu1 %v2315_v49 }
 0x492   : > { %v1193_v61 = vpack.c.bf16 %v1187_v58, %v1185_v57  ;;  %2121 = vmatprep.subr.bf16.mxu1 %v2316_v55  ;;  %2150 = vmatpush3.bf16.msra.mxu0 %v2324_v59 }
 0x493   : > { %2151 = vmatprep.subr.bf16.mxu0 %v2325_v33 }
 0x494   : > { %2110 = vmatmul.mubr.msk.bf16.gmra.mxu1 %vm1055_vm0, %v1193_v61 }
 0x495   : > { %2122 = vmatpush3.bf16.msra.mxu1 %v2316_v55 }
 0x496   : > { %2123 = vmatprep.subr.bf16.mxu1 %v2317_v63  ;;  %2152 = vmatpush3.bf16.msra.mxu0 %v2325_v33 }
 0x497   : > { %2153 = vmatprep.subr.bf16.mxu0 %v2326_v35 }
 0x499   : > { %2124 = vmatpush3.bf16.msra.mxu1 %v2317_v63 }
 0x49a   : > { %2125 = vmatprep.subr.bf16.mxu1 %v2318_v3  ;;  %2154 = vmatpush3.bf16.msra.mxu0 %v2326_v35 }
 0x49b   : > { %2155 = vmatprep.subr.bf16.mxu0 %v2327_v1 }
 0x49d   : > { %2126 = vmatpush3.bf16.msra.mxu1 %v2318_v3 }
 0x49e   : > { %2127 = vmatprep.subr.bf16.mxu1 %v2319_v5  ;;  %2156 = vmatpush3.bf16.msra.mxu0 %v2327_v1 }
 0x4a1   : > { %2128 = vmatpush3.bf16.msra.mxu1 %v2319_v5 }
 0x4a2   : > { %2169 = vmatprep.subr.bf16.mxu1 %v2320_v0 }
 0x544   : > { %v2103_v11 = vpop.f32.mrf.mxu1 }
 0x546   : > { %v1252_v13 = vpop.f32.mrf.mxu1 }
 0x548   : > { %v2104_v15 = vpop.f32.mrf.mxu1 }
 0x549   : > { %v1300_v18 = vpack.c.bf16 %v2104_v15, %v2103_v11  ;;  %v1492_v15 = vsub.s32 5, %v2846_v28 }
 0x54a   : > { %v1255_v17 = vpop.f32.mrf.mxu1 }
 0x54b   : > { %v1299_v4 = vpack.c.bf16 %v1255_v17, %v1252_v13  ;;  %v2376_v17 = vld [vmem:[#allocation10] sm:$0xff] }
 0x54c   : > { %v2107_v62 = vpop.f32.mrf.mxu1 }
 0x54d   : > { %2129 = vmatprep.mubr.bf16.mxu1 %v1299_v4  ;;  %v1493_v4 = vrot.slane %v2376_v17, %v1492_v15 }
 0x54e   : > { %v1268_v20 = vpop.f32.mrf.mxu1  ;;  %2130 = vmatmul.mubr.bf16.vlgmr.msra.gmra.mxu1 %v1300_v18 }
 0x54f   : > { %2177 = vmatpush3.bf16.msra.mxu1 %v2320_v0 }
 0x550   : > { %v2108_v21 = vpop.f32.mrf.mxu1  ;;  %2170 = vmatprep.subr.bf16.mxu1 %v2321_v7 }
 0x551   : > { %v1302_v25 = vpack.c.bf16 %v2108_v21, %v2107_v62 }
 0x552   : > { %v1271_v22 = vpop.f32.mrf.mxu1 }
 0x553   : > { %v1301_v24 = vpack.c.bf16 %v1271_v22, %v1268_v20  ;;  %2178 = vmatpush3.bf16.msra.mxu1 %v2321_v7 }
 0x554   : > { %v2111_v26 = vpop.f32.mrf.mxu1  ;;  %2171 = vmatprep.subr.bf16.mxu1 %v2322_v8 }
 0x555   : > { %2133 = vmatprep.mubr.bf16.mxu1 %v1301_v24 }
 0x556   : > { %v1284_v27 = vpop.f32.mrf.mxu1  ;;  %2134 = vmatmul.mubr.bf16.gmra.mxu1 %v1302_v25 }
 0x557   : > { %2179 = vmatpush3.bf16.msra.mxu1 %v2322_v8 }
 0x558   : > { %v2112_v12 = vpop.f32.mrf.mxu1  ;;  %2172 = vmatprep.subr.bf16.mxu1 %v2323_v10 }
 0x559   : > { %v1304_v31 = vpack.c.bf16 %v2112_v12, %v2111_v26 }
 0x55a   : > { %v1287_v16 = vpop.f32.mrf.mxu1 }
 0x55b   : > { %v1303_v29 = vpack.c.bf16 %v1287_v16, %v1284_v27  ;;  %2180 = vmatpush3.bf16.msra.mxu1 %v2323_v10 }
 0x55c   : > { %2173 = vmatprep.subr.bf16.mxu1 %v2324_v59 }
 0x55d   : > { %2137 = vmatprep.mubr.bf16.mxu1 %v1303_v29 }
 0x55e   : > { %2138 = vmatmul.mubr.bf16.gmra.mxu1 %v1304_v31 }
 0x55f   : > { %2181 = vmatpush3.bf16.msra.mxu1 %v2324_v59 }
 0x560   : > { %2174 = vmatprep.subr.bf16.mxu1 %v2325_v33 }
 0x563   : > { %2182 = vmatpush3.bf16.msra.mxu1 %v2325_v33 }
 0x564   : > { %2175 = vmatprep.subr.bf16.mxu1 %v2326_v35 }
 0x567   : > { %2183 = vmatpush3.bf16.msra.mxu1 %v2326_v35 }
 0x568   : > { %2176 = vmatprep.subr.bf16.mxu1 %v2327_v1 }
 0x56b   : > { %2184 = vmatpush3.bf16.msra.mxu1 %v2327_v1 }
 0x60e   : > { %v2131_v6 = vpop.f32.mrf.mxu1 }
 0x60f   : > { %v1417_v37 = vadd.f32 %v2131_v6, %v1325_v23 }
 0x610   : > { %v1408_v34 = vpop.f32.mrf.mxu1 }
 0x611   : > { %v1409_v36 = vadd.f32 %v1408_v34, %v1325_v23  ;;  %v1457_v43 = vmax.f32 %v1417_v37, 0.0 }
 0x612   : > { %v2132_v9 = vpop.f32.mrf.mxu1 }
 0x613   : > { %v1420_v14 = vadd.f32 %v2132_v9, %v1325_v23  ;;  %v1455_v42 = vmax.f32 %v1409_v36, 0.0 }
 0x614   : > { %v1411_v38 = vpop.f32.mrf.mxu1 }
 0x615   : > { %v1412_v39 = vadd.f32 %v1411_v38, %v1325_v23  ;;  %v1458_v40 = vmax.f32 %v1420_v14, 0.0 }
 0x616   : > { %v2135_v41 = vpop.f32.mrf.mxu1 }
 0x617   : > { %v1456_v19 = vmax.f32 %v1412_v39, 0.0  ;;  %v1468_v44 = vpack.c.bf16 %v1458_v40, %v1457_v43  ;;  %v1433_v30 = vadd.f32 %v2135_v41, %v1325_v23 }
 0x618   : > { %v1424_v60 = vpop.f32.mrf.mxu1 }
 0x619   : > { %v1467_v32 = vpack.c.bf16 %v1456_v19, %v1455_v42  ;;  %v1425_v46 = vadd.f32 %v1424_v60, %v1325_v23  ;;  %v1461_v54 = vmax.f32 %v1433_v30, 0.0 }
 0x61a   : > { %v2136_v45 = vpop.f32.mrf.mxu1 }
 0x61b   : > { %v1436_v47 = vadd.f32 %v2136_v45, %v1325_v23  ;;  %2157 = vmatprep.mubr.bf16.mxu0 %v1467_v32  ;;  %v1459_v52 = vmax.f32 %v1425_v46, 0.0 }
 0x61c   : > { %v1427_v48 = vpop.f32.mrf.mxu1  ;;  %2158 = vmatmul.mubr.bf16.vlgmr.msra.gmra.mxu0 %v1468_v44 }
 0x61d   : > { %v1428_v49 = vadd.f32 %v1427_v48, %v1325_v23  ;;  %v1462_v50 = vmax.f32 %v1436_v47, 0.0 }
 0x61e   : > { %v2139_v51 = vpop.f32.mrf.mxu1 }
 0x61f   : > { %v1460_v53 = vmax.f32 %v1428_v49, 0.0  ;;  %v1470_v57 = vpack.c.bf16 %v1462_v50, %v1461_v54  ;;  %v1449_v3 = vadd.f32 %v2139_v51, %v1325_v23 }
 0x620   : > { %v1440_v55 = vpop.f32.mrf.mxu1 }
 0x621   : > { %v1469_v56 = vpack.c.bf16 %v1460_v53, %v1459_v52  ;;  %v1441_v61 = vadd.f32 %v1440_v55, %v1325_v23  ;;  %v1465_v59 = vmax.f32 %v1449_v3, 0.0 }
 0x622   : > { %v2140_v58 = vpop.f32.mrf.mxu1 }
 0x623   : > { %v1452_v63 = vadd.f32 %v2140_v58, %v1325_v23  ;;  %2161 = vmatprep.mubr.bf16.mxu0 %v1469_v56  ;;  %v1463_v8 = vmax.f32 %v1441_v61, 0.0 }
 0x624   : > { %v1443_v5 = vpop.f32.mrf.mxu1  ;;  %2162 = vmatmul.mubr.bf16.gmra.mxu0 %v1470_v57 }
 0x625   : > { %v1444_v0 = vadd.f32 %v1443_v5, %v1325_v23  ;;  %v1466_v7 = vmax.f32 %v1452_v63, 0.0 }
 0x627   : > { %v1464_v10 = vmax.f32 %v1444_v0, 0.0  ;;  %v1472_v13 = vpack.c.bf16 %v1466_v7, %v1465_v59 }
 0x629   : > { %v1471_v11 = vpack.c.bf16 %v1464_v10, %v1463_v8 }
 0x62b   : > { %2165 = vmatprep.mubr.bf16.mxu1 %v1471_v11 }
 0x62c   : > { %2166 = vmatmul.mubr.bf16.vlgmr.msra.gmra.mxu1 %v1472_v13 }
 0x6dc   : > { %v2159_v18 = vpop.f32.mrf.mxu0 }
 0x6dd   : > { %v1585_v62 = vadd.f32 %v2159_v18, %v1493_v4 }
 0x6de   : > { %v1576_v20 = vpop.f32.mrf.mxu0 }
 0x6df   : > { %1625 = vst [vmem:[%s2998_s30 + $0x10] sm:$0xff] %v1585_v62  ;;  %v1577_v21 = vadd.f32 %v1576_v20, %v1493_v4 }
 0x6e0   : > { %v2160_v22 = vpop.f32.mrf.mxu0 }
 0x6e1   : > { %1623 = vst [vmem:[%s2998_s30] sm:$0xff] %v1577_v21  ;;  %v1588_v28 = vadd.f32 %v2160_v22, %v1493_v4 }
 0x6e2   : > { %v1579_v24 = vpop.f32.mrf.mxu0 }
 0x6e3   : > { %1626 = vst [vmem:[%s2998_s30 + $0x18] sm:$0xff] %v1588_v28  ;;  %v1580_v25 = vadd.f32 %v1579_v24, %v1493_v4 }
 0x6e4   : > { %v2163_v26 = vpop.f32.mrf.mxu0 }
 0x6e5   : > { %1624 = vst [vmem:[%s2998_s30 + $0x8] sm:$0xff] %v1580_v25  ;;  %v1601_v27 = vadd.f32 %v2163_v26, %v1493_v4 }
 0x6e6   : > { %v1592_v12 = vpop.f32.mrf.mxu0 }
 0x6e7   : > { %1629 = vst [vmem:[%s2998_s30 + $0x30] sm:$0xff] %v1601_v27  ;;  %v1593_v16 = vadd.f32 %v1592_v12, %v1493_v4 }
 0x6e8   : > { %v2164_v29 = vpop.f32.mrf.mxu0 }
 0x6e9   : > { %1627 = vst [vmem:[%s2998_s30 + $0x20] sm:$0xff] %v1593_v16  ;;  %v1604_v31 = vadd.f32 %v2164_v29, %v1493_v4 }
 0x6ea   : > { %v1595_v33 = vpop.f32.mrf.mxu0 }
 0x6eb   : > { %1630 = vst [vmem:[%s2998_s30 + $0x38] sm:$0xff] %v1604_v31  ;;  %v1596_v35 = vadd.f32 %v1595_v33, %v1493_v4 }
 0x6ec   : > { %v2167_v1 = vpop.f32.mrf.mxu1 }
 0x6ed   : > { %1628 = vst [vmem:[%s2998_s30 + $0x28] sm:$0xff] %v1596_v35  ;;  %v1617_v2 = vadd.f32 %v2167_v1, %v1493_v4 }
 0x6ee   : > { %v1608_v6 = vpop.f32.mrf.mxu1 }
 0x6ef   : > { %1633 = vst [vmem:[%s2998_s30 + $0x50] sm:$0xff] %v1617_v2  ;;  %v1609_v23 = vadd.f32 %v1608_v6, %v1493_v4 }
 0x6f0   : > { %v2168_v34 = vpop.f32.mrf.mxu1 }
 0x6f1   : > { %1631 = vst [vmem:[%s2998_s30 + $0x40] sm:$0xff] %v1609_v23  ;;  %v1620_v9 = vadd.f32 %v2168_v34, %v1493_v4 }
 0x6f2   : > { %v1611_v36 = vpop.f32.mrf.mxu1 }
 0x6f3   : > { %1634 = vst [vmem:[%s2998_s30 + $0x58] sm:$0xff] %v1620_v9  ;;  %v1612_v14 = vadd.f32 %v1611_v36, %v1493_v4 }
 0x6f5   : > { %1632 = vst [vmem:[%s2998_s30 + $0x48] sm:$0xff] %v1612_v14 }
 0x6f6   : > { %2524 = shalt.err (!%p2521_p6)
}
 0x6f7   : > { %s2525_s11 = scalar_lea.hbm %s3015_s16, 1536  ;;  %s2529_s2 = scalar_lea.hbm %s3067_s5, 3072 }
 0x6f8   : > { %p2526_p0 = scmp.ne.s32.totalorder %s3015_s16, %s2525_s11  ;;  %p2530_p11 = scmp.lt.s32.totalorder %s3015_s16, %s3067_s5 }
 0x6f9   : > { %p2531_p13 = scmp.lt.s32.totalorder %s2529_s2, %s2525_s11 }
 0x6fa   : > { %p2527_p7 = pnand %p2526_p0, %p3091_p1 }
 0x6fb   : > { %p2532_p5 = por %p2531_p13, %p2530_p11 }
 0x6fc   : > { %p2528_p8 = pneg %p2527_p7 }
 0x6fe   : > { %p2533_p10 = pnand %p2532_p5, %p2528_p8 }
 0x700   : > { %2536 = shalt.err (!%p2533_p10)
}
 0x701   : > { %s2599_s14 = smov 128   ;;  %s2600_s24 = smov 8  }
 0x702   : > { %2202 = dma.vmem_to_hbm [thread:$0]  (%p3091_p1), %s3017_s12, 1536, %s3015_s16, %s1636_s22, %s2599_s14, %s2599_s14, %s2600_s24  }
 0x703 PF: > { %s1664_s30 = sand.u32 1, %s2575_s18   ;;  %p3092_p2 = scmp.ne.s32.totalorder %s3075_s25, 0 }
 0x704   : > { %p3093_p3 = scmp.ge.s32.totalorder %s2587_s21, 2  ;;  %s1665_s23 = scalar_lea.sflag [#allocation4], %s1664_s30 }
 0x706   : > { %p2222_p9 = pnand %p3093_p3, %p3092_p2 }
 0x708   : > { %p2223_p12 = pneg %p2222_p9 }
 0x70a   : > { %2570 = dma.done.wait (%p2223_p12), %s1665_s23, 1536  }
 0x70b   : > { %2572 = vsyncadd (%p2223_p12), %s1665_s23, 4294965760  ;;  %p22_p4 = scmp.ge.s32.totalorder %s2706_s27, 4   ;;  %s3094_s18 = smov %s2579_s19 }
 0x70c   : > { %s3095_s19 = smov %s2583_s20  ;;  %s3096_s20 = smov %s2724_s29 }
 0x70d   : > { %s3097_s21 = smov %s2706_s27  ;;  %24 = sbr.rel (!%p22_p4) target bundleno = 12 (0xc), region = 115 }
 0x712   :  { %1670 = vsyncpa [#allocation3], 1 }
 0x713   :  { %1672 = vsyncpa [#allocation3 + $0x1], 1 }
 0x714   :  { %1673 = vsyncpa [#allocation6], 1 }
 0x715   :  { %1675 = vsyncpa [#allocation6 + $0x1], 1 }
 0x716   :  { %1676 = vsyncpa [#allocation9], 1 }
 0x717   :  { %1677 = vsyncpa [#allocation4], 1 }
 0x718   :  { %1679 = vsyncpa [#allocation4 + $0x1], 1 }

</bundles_post_ra>
